<compile_context>
chip_gen: v6e
topology: v6e:2x2x1
jax: 0.10.0
libtpu: 0.0.40
codegen_flags: <defaults>
</compile_context>

<pallas_src>
import jax
import jax.numpy as jnp
from jax.experimental import pallas as pl
from jax.experimental.pallas import tpu as pltpu


# ----------------------------------------------------------------------------
# Fused kernel: 3-layer LSTM recurrence + final Linear
# ----------------------------------------------------------------------------
def fused_lstm_fc_kernel(xw0_ref, whh0_ref, wih12_ref, whh12_ref, b12_ref,
                         wfc_ref, bfc_ref, o_ref):
    """
    xw0_ref  : (T*Bp, 4H) f32   layer-0 input projection (+ bias), time-major slabs
    whh0_ref : (H, 4H)    bf16  layer-0 hidden->gates weight (pre-transposed)
    wih12_ref: (L-1, H, 4H) bf16  layers 1.. input->gates weights
    whh12_ref: (L-1, H, 4H) bf16  layers 1.. hidden->gates weights
    b12_ref  : (L-1, 1, 4H) f32   layers 1.. combined bias (b_ih + b_hh)
    wfc_ref  : (H, O)     f32   final Linear weight (pre-transposed)
    bfc_ref  : (1, O)     f32   final Linear bias
    o_ref    : (Bp, O)    f32   model output
    """
    TB, H4 = xw0_ref.shape
    H = H4 // 4
    Bp = o_ref.shape[0]
    T = TB // Bp
    n_upper = wih12_ref.shape[0]                       # num_layers - 1

    # ---- hoisted constants (built once, reused by every unrolled step) ----
    lane = jax.lax.broadcasted_iota(jnp.int32, (Bp, H4), 1)
    g_mask = (lane >= 2 * H) & (lane < 3 * H)          # "g" gate lanes
    g_scale = jnp.where(g_mask, jnp.float32(2.0), jnp.float32(1.0))
    g_off = jnp.where(g_mask, jnp.float32(-1.0), jnp.float32(0.0))
    zero = jnp.zeros((Bp, H), jnp.float32)

    def cell(gates, c):
        # One full-tile sigmoid per step; tanh on g lanes via tanh(x)=2*sigmoid(2x)-1.
        act = jax.nn.sigmoid(gates * g_scale) * g_scale + g_off
        i_g = act[:, 0 * H:1 * H]
        f_g = act[:, 1 * H:2 * H]
        g_g = act[:, 2 * H:3 * H]
        o_g = act[:, 3 * H:4 * H]
        c = f_g * c + i_g * g_g
        h = o_g * jnp.tanh(c)
        return h, c

    # ---- layer 0: whole-sequence input projection was precomputed (xw0) ----
    whh0 = whh0_ref[...]                               # (H, 4H) bf16
    h, c = zero, zero
    h_seq = []
    for t in range(T):                                 # statically unrolled
        gates = xw0_ref[t * Bp:(t + 1) * Bp, :] + jnp.dot(
            h.astype(jnp.bfloat16), whh0, preferred_element_type=jnp.float32)
        h, c = cell(gates, c)
        h_seq.append(h)

    # ---- layers 1..L-1: per-step fused projection, wavefront dataflow ------
    # h_seq[t] is consumed as a value (no ref roundtrip), so step (l, t) only
    # depends on (l, t-1) and (l-1, t); the two small dots are independent and
    # the input-projection dot stays off the recurrent critical path.
    for layer in range(n_upper):                       # statically unrolled
        last = layer == n_upper - 1
        wih = wih12_ref[layer]                         # (H, 4H) bf16
        whh = whh12_ref[layer]                         # (H, 4H) bf16
        b = b12_ref[layer]                             # (1, 4H) f32
        h, c = zero, zero
        nxt = []
        for t in range(T):                             # statically unrolled
            gates = (jnp.dot(h_seq[t].astype(jnp.bfloat16), wih,
                             preferred_element_type=jnp.float32)
                     + jnp.dot(h.astype(jnp.bfloat16), whh,
                               preferred_element_type=jnp.float32)
                     + b)
            h, c = cell(gates, c)
            if not last:                               # top layer: only h_{T-1} needed
                nxt.append(h)
        if not last:
            h_seq = nxt

    # ---- fused FC head on the last timestep of the top layer (f32) ---------
    o_ref[...] = (jnp.dot(h, wfc_ref[...], preferred_element_type=jnp.float32)
                  + bfc_ref[...])


# ----------------------------------------------------------------------------
# Wrapper
# ----------------------------------------------------------------------------
_VMEM = pl.BlockSpec(memory_space=pltpu.MemorySpace.VMEM)


@jax.jit
def lstm_model_forward(x, wih0, b0, whh0, wih12, whh12, b12, wfc, bfc):
    """x: (B, T, input_size) float32, batch_first — same as the PyTorch module."""
    B, T, I = x.shape
    H, H4 = whh0.shape
    O = wfc.shape[1]
    Bp = max(8, ((B + 7) // 8) * 8)                    # pad batch to f32 sublane tile

    # Hoisted layer-0 input projection (+ fused bias), done by XLA outside the
    # kernel: with input_size=1 this is an outer product, and it removes the
    # mostly-zero padded-x DMA and the almost-all-zero layer-0 MXU matmul.
    x_tm = jnp.transpose(x, (1, 0, 2))                 # (T, B, I) time-major
    x_tm = jnp.pad(x_tm, ((0, 0), (0, Bp - B), (0, 0)))
    xw0 = x_tm.reshape(T * Bp, I) @ wih0 + b0          # (T*Bp, 4H) f32

    out_pad = pl.pallas_call(
        fused_lstm_fc_kernel,
        out_shape=jax.ShapeDtypeStruct((Bp, O), jnp.float32),
        in_specs=[_VMEM] * 7,
        out_specs=_VMEM,
    )(xw0, whh0, wih12, whh12, b12, wfc, bfc)

    return out_pad[:B]                                 # drop batch padding


# ----------------------------------------------------------------------------
# Deterministic parameter construction (PyTorch-style uniform(-k, k) init).
# Returns PyTorch-layout params (for the reference) and the packed kernel layout.
# ----------------------------------------------------------------------------
def make_params(key, input_size, hidden_size, num_layers, output_size):
    H = hidden_size
    k = 1.0 / (H ** 0.5)
    pt_lstm = []
    for layer in range(num_layers):
        in_sz = input_size if layer == 0 else H
        key, k1, k2, k3, k4 = jax.random.split(key, 5)
        w_ih = jax.random.uniform(k1, (4 * H, in_sz), jnp.float32, -k, k)
        w_hh = jax.random.uniform(k2, (4 * H, H), jnp.float32, -k, k)
        b_ih = jax.random.uniform(k3, (4 * H,), jnp.float32, -k, k)
        b_hh = jax.random.uniform(k4, (4 * H,), jnp.float32, -k, k)
        pt_lstm.append((w_ih, w_hh, b_ih, b_hh))

    key, k5, k6 = jax.random.split(key, 3)
    w_fc = jax.random.uniform(k5, (output_size, H), jnp.float32, -k, k)
    b_fc = jax.random.uniform(k6, (output_size,), jnp.float32, -k, k)
    pt_fc = (w_fc, b_fc)

    # ---- kernel layout -------------------------------------------------
    w_ih0, w_hh0, b_ih0, b_hh0 = pt_lstm[0]
    wih0 = w_ih0.T                                          # (I, 4H)  f32 (wrapper)
    b0 = (b_ih0 + b_hh0).reshape(1, 4 * H)                  # (1, 4H)  f32 (wrapper)
    whh0 = w_hh0.T.astype(jnp.bfloat16)                     # (H, 4H)  bf16

    wih12 = jnp.stack([pt_lstm[l][0].T for l in range(1, num_layers)]
                      ).astype(jnp.bfloat16)                # (L-1, H, 4H)
    whh12 = jnp.stack([pt_lstm[l][1].T for l in range(1, num_layers)]
                      ).astype(jnp.bfloat16)                # (L-1, H, 4H)
    b12 = jnp.stack([(pt_lstm[l][2] + pt_lstm[l][3]).reshape(1, 4 * H)
                     for l in range(1, num_layers)])        # (L-1, 1, 4H) f32

    wfc = w_fc.T                                            # (H, O) f32
    bfc = b_fc.reshape(1, output_size)                      # (1, O) f32

    kernel_params = (wih0, b0, whh0, wih12, whh12, b12, wfc, bfc)
    return pt_lstm, pt_fc, kernel_params


# ----------------------------------------------------------------------------
# Pure-JAX f32 reference mirroring torch.nn.LSTM(batch_first=True) + Linear
# ----------------------------------------------------------------------------
def reference_forward(x, pt_lstm, pt_fc):
    B, T, _ = x.shape
    seq = x
    for (w_ih, w_hh, b_ih, b_hh) in pt_lstm:
        H = w_hh.shape[1]
        h = jnp.zeros((B, H), jnp.float32)
        c = jnp.zeros((B, H), jnp.float32)
        outs = []
        for t in range(T):
            gates = seq[:, t, :] @ w_ih.T + h @ w_hh.T + b_ih + b_hh
            i_g = jax.nn.sigmoid(gates[:, 0 * H:1 * H])
            f_g = jax.nn.sigmoid(gates[:, 1 * H:2 * H])
            g_g = jnp.tanh(gates[:, 2 * H:3 * H])
            o_g = jax.nn.sigmoid(gates[:, 3 * H:4 * H])
            c = f_g * c + i_g * g_g
            h = o_g * jnp.tanh(c)
            outs.append(h)
        seq = jnp.stack(outs, axis=1)                       # (B, T, H)
    w_fc, b_fc = pt_fc
    return seq[:, -1, :] @ w_fc.T + b_fc


# ----------------------------------------------------------------------------
# Main
# ----------------------------------------------------------------------------
if __name__ == "__main__":
    # Small shapes consistent with the module's forward:
    # x: (batch=2, seq=8, input_size=1); hidden_size=32; num_layers=3; output_size=1
    BATCH, SEQ, INPUT_SIZE = 2, 8, 1
    HIDDEN_SIZE, NUM_LAYERS, OUTPUT_SIZE = 32, 3, 1

    key = jax.random.PRNGKey(0)
    key, xkey, pkey = jax.random.split(key, 3)
    x = jax.random.normal(xkey, (BATCH, SEQ, INPUT_SIZE), jnp.float32)
    pt_lstm, pt_fc, kparams = make_params(
        pkey, INPUT_SIZE, HIDDEN_SIZE, NUM_LAYERS, OUTPUT_SIZE
    )

    out = lstm_model_forward(x, *kparams)
    out = jax.block_until_ready(out)

    ref = reference_forward(x, pt_lstm, pt_fc)
    assert out.shape == (BATCH, OUTPUT_SIZE), out.shape
    # bf16 matmul operands + tanh-via-sigmoid identity => looser tolerance vs f32 ref.
    assert jnp.allclose(out, ref, atol=3e-2, rtol=3e-2), (out, ref)

    print("KERNEL_OK")
</pallas_src>

<mosaic_0001>
module attributes {stable_mosaic.version = 11 : i64} {
  func.func @fused_lstm_fc_kernel(%arg0: memref<64x128xf32, #tpu.memory_space<vmem>>, %arg1: memref<32x128xbf16, #tpu.memory_space<vmem>>, %arg2: memref<2x32x128xbf16, #tpu.memory_space<vmem>>, %arg3: memref<2x32x128xbf16, #tpu.memory_space<vmem>>, %arg4: memref<2x1x128xf32, #tpu.memory_space<vmem>>, %arg5: memref<32x1xf32, #tpu.memory_space<vmem>>, %arg6: memref<1x1xf32, #tpu.memory_space<vmem>>, %arg7: memref<8x1xf32, #tpu.memory_space<vmem>>) attributes {dimension_semantics = [], scalar_prefetch = 0 : i64, scratch_operands = 0 : i64, tpu.core_type = #tpu.core_type<tc>} {
    %0 = tpu.iota {dimensions = array<i32: 1>} : vector<8x128xi32>
    %c64_i32 = arith.constant 64 : i32
    %1 = vector.broadcast %c64_i32 : i32 to vector<8x128xi32>
    %2 = arith.cmpi sge, %0, %1 : vector<8x128xi32>
    %c96_i32 = arith.constant 96 : i32
    %3 = vector.broadcast %c96_i32 : i32 to vector<8x128xi32>
    %4 = arith.cmpi slt, %0, %3 : vector<8x128xi32>
    %5 = arith.andi %2, %4 : vector<8x128xi1>
    %cst = arith.constant 2.000000e+00 : f32
    %cst_0 = arith.constant 1.000000e+00 : f32
    %6 = vector.broadcast %cst : f32 to vector<8x128xf32>
    %7 = vector.broadcast %cst_0 : f32 to vector<8x128xf32>
    %8 = arith.select %5, %6, %7 : vector<8x128xi1>, vector<8x128xf32>
    %cst_1 = arith.constant -1.000000e+00 : f32
    %cst_2 = arith.constant 0.000000e+00 : f32
    %9 = vector.broadcast %cst_1 : f32 to vector<8x128xf32>
    %10 = vector.broadcast %cst_2 : f32 to vector<8x128xf32>
    %11 = arith.select %5, %9, %10 : vector<8x128xi1>, vector<8x128xf32>
    %cst_3 = arith.constant 0.000000e+00 : f32
    %12 = vector.broadcast %cst_3 : f32 to vector<8x32xf32>
    %c0 = arith.constant 0 : index
    %c0_4 = arith.constant 0 : index
    %13 = vector.load %arg1[%c0, %c0_4] : memref<32x128xbf16, #tpu.memory_space<vmem>>, vector<32x128xbf16>
    %c0_5 = arith.constant 0 : index
    %c0_6 = arith.constant 0 : index
    %14 = vector.load %arg0[%c0_5, %c0_6] : memref<64x128xf32, #tpu.memory_space<vmem>>, vector<8x128xf32>
    %15 = arith.truncf %12 : vector<8x32xf32> to vector<8x32xbf16>
    %cst_7 = arith.constant dense<0.000000e+00> : vector<8x128xf32>
    %16 = tpu.matmul %15, %13, %cst_7 {dimension_numbers = #tpu.dot_dimension_numbers<[1], [0], [0], [1], [0, 0, 1, 1], [], []>} : vector<8x32xbf16>, vector<32x128xbf16>, vector<8x128xf32> -> vector<8x128xf32>
    %17 = arith.addf %14, %16 : vector<8x128xf32>
    %18 = arith.mulf %17, %8 : vector<8x128xf32>
    %19 = arith.negf %18 : vector<8x128xf32>
    %20 = math.exp %19 : vector<8x128xf32>
    %cst_8 = arith.constant 1.000000e+00 : f32
    %21 = vector.broadcast %cst_8 : f32 to vector<8x128xf32>
    %22 = arith.addf %21, %20 : vector<8x128xf32>
    %23 = arith.divf %21, %22 : vector<8x128xf32>
    %24 = arith.mulf %23, %8 : vector<8x128xf32>
    %25 = arith.addf %24, %11 : vector<8x128xf32>
    %26 = vector.extract_strided_slice %25 {offsets = [0, 0], sizes = [8, 32], strides = [1, 1]} : vector<8x128xf32> to vector<8x32xf32>
    %27 = vector.extract_strided_slice %25 {offsets = [0, 32], sizes = [8, 32], strides = [1, 1]} : vector<8x128xf32> to vector<8x32xf32>
    %28 = vector.extract_strided_slice %25 {offsets = [0, 64], sizes = [8, 32], strides = [1, 1]} : vector<8x128xf32> to vector<8x32xf32>
    %29 = vector.extract_strided_slice %25 {offsets = [0, 96], sizes = [8, 32], strides = [1, 1]} : vector<8x128xf32> to vector<8x32xf32>
    %30 = arith.mulf %27, %12 : vector<8x32xf32>
    %31 = arith.mulf %26, %28 : vector<8x32xf32>
    %32 = arith.addf %30, %31 : vector<8x32xf32>
    %33 = math.tanh %32 : vector<8x32xf32>
    %34 = arith.mulf %29, %33 : vector<8x32xf32>
    %c8 = arith.constant 8 : index
    %c0_9 = arith.constant 0 : index
    %35 = vector.load %arg0[%c8, %c0_9] : memref<64x128xf32, #tpu.memory_space<vmem>>, vector<8x128xf32>
    %36 = arith.truncf %34 : vector<8x32xf32> to vector<8x32xbf16>
    %cst_10 = arith.constant dense<0.000000e+00> : vector<8x128xf32>
    %37 = tpu.matmul %36, %13, %cst_10 {dimension_numbers = #tpu.dot_dimension_numbers<[1], [0], [0], [1], [0, 0, 1, 1], [], []>} : vector<8x32xbf16>, vector<32x128xbf16>, vector<8x128xf32> -> vector<8x128xf32>
    %38 = arith.addf %35, %37 : vector<8x128xf32>
    %39 = arith.mulf %38, %8 : vector<8x128xf32>
    %40 = arith.negf %39 : vector<8x128xf32>
    %41 = math.exp %40 : vector<8x128xf32>
    %cst_11 = arith.constant 1.000000e+00 : f32
    %42 = vector.broadcast %cst_11 : f32 to vector<8x128xf32>
    %43 = arith.addf %42, %41 : vector<8x128xf32>
    %44 = arith.divf %42, %43 : vector<8x128xf32>
    %45 = arith.mulf %44, %8 : vector<8x128xf32>
    %46 = arith.addf %45, %11 : vector<8x128xf32>
    %47 = vector.extract_strided_slice %46 {offsets = [0, 0], sizes = [8, 32], strides = [1, 1]} : vector<8x128xf32> to vector<8x32xf32>
    %48 = vector.extract_strided_slice %46 {offsets = [0, 32], sizes = [8, 32], strides = [1, 1]} : vector<8x128xf32> to vector<8x32xf32>
    %49 = vector.extract_strided_slice %46 {offsets = [0, 64], sizes = [8, 32], strides = [1, 1]} : vector<8x128xf32> to vector<8x32xf32>
    %50 = vector.extract_strided_slice %46 {offsets = [0, 96], sizes = [8, 32], strides = [1, 1]} : vector<8x128xf32> to vector<8x32xf32>
    %51 = arith.mulf %48, %32 : vector<8x32xf32>
    %52 = arith.mulf %47, %49 : vector<8x32xf32>
    %53 = arith.addf %51, %52 : vector<8x32xf32>
    %54 = math.tanh %53 : vector<8x32xf32>
    %55 = arith.mulf %50, %54 : vector<8x32xf32>
    %c16 = arith.constant 16 : index
    %c0_12 = arith.constant 0 : index
    %56 = vector.load %arg0[%c16, %c0_12] : memref<64x128xf32, #tpu.memory_space<vmem>>, vector<8x128xf32>
    %57 = arith.truncf %55 : vector<8x32xf32> to vector<8x32xbf16>
    %cst_13 = arith.constant dense<0.000000e+00> : vector<8x128xf32>
    %58 = tpu.matmul %57, %13, %cst_13 {dimension_numbers = #tpu.dot_dimension_numbers<[1], [0], [0], [1], [0, 0, 1, 1], [], []>} : vector<8x32xbf16>, vector<32x128xbf16>, vector<8x128xf32> -> vector<8x128xf32>
    %59 = arith.addf %56, %58 : vector<8x128xf32>
    %60 = arith.mulf %59, %8 : vector<8x128xf32>
    %61 = arith.negf %60 : vector<8x128xf32>
    %62 = math.exp %61 : vector<8x128xf32>
    %cst_14 = arith.constant 1.000000e+00 : f32
    %63 = vector.broadcast %cst_14 : f32 to vector<8x128xf32>
    %64 = arith.addf %63, %62 : vector<8x128xf32>
    %65 = arith.divf %63, %64 : vector<8x128xf32>
    %66 = arith.mulf %65, %8 : vector<8x128xf32>
    %67 = arith.addf %66, %11 : vector<8x128xf32>
    %68 = vector.extract_strided_slice %67 {offsets = [0, 0], sizes = [8, 32], strides = [1, 1]} : vector<8x128xf32> to vector<8x32xf32>
    %69 = vector.extract_strided_slice %67 {offsets = [0, 32], sizes = [8, 32], strides = [1, 1]} : vector<8x128xf32> to vector<8x32xf32>
    %70 = vector.extract_strided_slice %67 {offsets = [0, 64], sizes = [8, 32], strides = [1, 1]} : vector<8x128xf32> to vector<8x32xf32>
    %71 = vector.extract_strided_slice %67 {offsets = [0, 96], sizes = [8, 32], strides = [1, 1]} : vector<8x128xf32> to vector<8x32xf32>
    %72 = arith.mulf %69, %53 : vector<8x32xf32>
    %73 = arith.mulf %68, %70 : vector<8x32xf32>
    %74 = arith.addf %72, %73 : vector<8x32xf32>
    %75 = math.tanh %74 : vector<8x32xf32>
    %76 = arith.mulf %71, %75 : vector<8x32xf32>
    %c24 = arith.constant 24 : index
    %c0_15 = arith.constant 0 : index
    %77 = vector.load %arg0[%c24, %c0_15] : memref<64x128xf32, #tpu.memory_space<vmem>>, vector<8x128xf32>
    %78 = arith.truncf %76 : vector<8x32xf32> to vector<8x32xbf16>
    %cst_16 = arith.constant dense<0.000000e+00> : vector<8x128xf32>
    %79 = tpu.matmul %78, %13, %cst_16 {dimension_numbers = #tpu.dot_dimension_numbers<[1], [0], [0], [1], [0, 0, 1, 1], [], []>} : vector<8x32xbf16>, vector<32x128xbf16>, vector<8x128xf32> -> vector<8x128xf32>
    %80 = arith.addf %77, %79 : vector<8x128xf32>
    %81 = arith.mulf %80, %8 : vector<8x128xf32>
    %82 = arith.negf %81 : vector<8x128xf32>
    %83 = math.exp %82 : vector<8x128xf32>
    %cst_17 = arith.constant 1.000000e+00 : f32
    %84 = vector.broadcast %cst_17 : f32 to vector<8x128xf32>
    %85 = arith.addf %84, %83 : vector<8x128xf32>
    %86 = arith.divf %84, %85 : vector<8x128xf32>
    %87 = arith.mulf %86, %8 : vector<8x128xf32>
    %88 = arith.addf %87, %11 : vector<8x128xf32>
    %89 = vector.extract_strided_slice %88 {offsets = [0, 0], sizes = [8, 32], strides = [1, 1]} : vector<8x128xf32> to vector<8x32xf32>
    %90 = vector.extract_strided_slice %88 {offsets = [0, 32], sizes = [8, 32], strides = [1, 1]} : vector<8x128xf32> to vector<8x32xf32>
    %91 = vector.extract_strided_slice %88 {offsets = [0, 64], sizes = [8, 32], strides = [1, 1]} : vector<8x128xf32> to vector<8x32xf32>
    %92 = vector.extract_strided_slice %88 {offsets = [0, 96], sizes = [8, 32], strides = [1, 1]} : vector<8x128xf32> to vector<8x32xf32>
    %93 = arith.mulf %90, %74 : vector<8x32xf32>
    %94 = arith.mulf %89, %91 : vector<8x32xf32>
    %95 = arith.addf %93, %94 : vector<8x32xf32>
    %96 = math.tanh %95 : vector<8x32xf32>
    %97 = arith.mulf %92, %96 : vector<8x32xf32>
    %c32 = arith.constant 32 : index
    %c0_18 = arith.constant 0 : index
    %98 = vector.load %arg0[%c32, %c0_18] : memref<64x128xf32, #tpu.memory_space<vmem>>, vector<8x128xf32>
    %99 = arith.truncf %97 : vector<8x32xf32> to vector<8x32xbf16>
    %cst_19 = arith.constant dense<0.000000e+00> : vector<8x128xf32>
    %100 = tpu.matmul %99, %13, %cst_19 {dimension_numbers = #tpu.dot_dimension_numbers<[1], [0], [0], [1], [0, 0, 1, 1], [], []>} : vector<8x32xbf16>, vector<32x128xbf16>, vector<8x128xf32> -> vector<8x128xf32>
    %101 = arith.addf %98, %100 : vector<8x128xf32>
    %102 = arith.mulf %101, %8 : vector<8x128xf32>
    %103 = arith.negf %102 : vector<8x128xf32>
    %104 = math.exp %103 : vector<8x128xf32>
    %cst_20 = arith.constant 1.000000e+00 : f32
    %105 = vector.broadcast %cst_20 : f32 to vector<8x128xf32>
    %106 = arith.addf %105, %104 : vector<8x128xf32>
    %107 = arith.divf %105, %106 : vector<8x128xf32>
    %108 = arith.mulf %107, %8 : vector<8x128xf32>
    %109 = arith.addf %108, %11 : vector<8x128xf32>
    %110 = vector.extract_strided_slice %109 {offsets = [0, 0], sizes = [8, 32], strides = [1, 1]} : vector<8x128xf32> to vector<8x32xf32>
    %111 = vector.extract_strided_slice %109 {offsets = [0, 32], sizes = [8, 32], strides = [1, 1]} : vector<8x128xf32> to vector<8x32xf32>
    %112 = vector.extract_strided_slice %109 {offsets = [0, 64], sizes = [8, 32], strides = [1, 1]} : vector<8x128xf32> to vector<8x32xf32>
    %113 = vector.extract_strided_slice %109 {offsets = [0, 96], sizes = [8, 32], strides = [1, 1]} : vector<8x128xf32> to vector<8x32xf32>
    %114 = arith.mulf %111, %95 : vector<8x32xf32>
    %115 = arith.mulf %110, %112 : vector<8x32xf32>
    %116 = arith.addf %114, %115 : vector<8x32xf32>
    %117 = math.tanh %116 : vector<8x32xf32>
    %118 = arith.mulf %113, %117 : vector<8x32xf32>
    %c40 = arith.constant 40 : index
    %c0_21 = arith.constant 0 : index
    %119 = vector.load %arg0[%c40, %c0_21] : memref<64x128xf32, #tpu.memory_space<vmem>>, vector<8x128xf32>
    %120 = arith.truncf %118 : vector<8x32xf32> to vector<8x32xbf16>
    %cst_22 = arith.constant dense<0.000000e+00> : vector<8x128xf32>
    %121 = tpu.matmul %120, %13, %cst_22 {dimension_numbers = #tpu.dot_dimension_numbers<[1], [0], [0], [1], [0, 0, 1, 1], [], []>} : vector<8x32xbf16>, vector<32x128xbf16>, vector<8x128xf32> -> vector<8x128xf32>
    %122 = arith.addf %119, %121 : vector<8x128xf32>
    %123 = arith.mulf %122, %8 : vector<8x128xf32>
    %124 = arith.negf %123 : vector<8x128xf32>
    %125 = math.exp %124 : vector<8x128xf32>
    %cst_23 = arith.constant 1.000000e+00 : f32
    %126 = vector.broadcast %cst_23 : f32 to vector<8x128xf32>
    %127 = arith.addf %126, %125 : vector<8x128xf32>
    %128 = arith.divf %126, %127 : vector<8x128xf32>
    %129 = arith.mulf %128, %8 : vector<8x128xf32>
    %130 = arith.addf %129, %11 : vector<8x128xf32>
    %131 = vector.extract_strided_slice %130 {offsets = [0, 0], sizes = [8, 32], strides = [1, 1]} : vector<8x128xf32> to vector<8x32xf32>
    %132 = vector.extract_strided_slice %130 {offsets = [0, 32], sizes = [8, 32], strides = [1, 1]} : vector<8x128xf32> to vector<8x32xf32>
    %133 = vector.extract_strided_slice %130 {offsets = [0, 64], sizes = [8, 32], strides = [1, 1]} : vector<8x128xf32> to vector<8x32xf32>
    %134 = vector.extract_strided_slice %130 {offsets = [0, 96], sizes = [8, 32], strides = [1, 1]} : vector<8x128xf32> to vector<8x32xf32>
    %135 = arith.mulf %132, %116 : vector<8x32xf32>
    %136 = arith.mulf %131, %133 : vector<8x32xf32>
    %137 = arith.addf %135, %136 : vector<8x32xf32>
    %138 = math.tanh %137 : vector<8x32xf32>
    %139 = arith.mulf %134, %138 : vector<8x32xf32>
    %c48 = arith.constant 48 : index
    %c0_24 = arith.constant 0 : index
    %140 = vector.load %arg0[%c48, %c0_24] : memref<64x128xf32, #tpu.memory_space<vmem>>, vector<8x128xf32>
    %141 = arith.truncf %139 : vector<8x32xf32> to vector<8x32xbf16>
    %cst_25 = arith.constant dense<0.000000e+00> : vector<8x128xf32>
    %142 = tpu.matmul %141, %13, %cst_25 {dimension_numbers = #tpu.dot_dimension_numbers<[1], [0], [0], [1], [0, 0, 1, 1], [], []>} : vector<8x32xbf16>, vector<32x128xbf16>, vector<8x128xf32> -> vector<8x128xf32>
    %143 = arith.addf %140, %142 : vector<8x128xf32>
    %144 = arith.mulf %143, %8 : vector<8x128xf32>
    %145 = arith.negf %144 : vector<8x128xf32>
    %146 = math.exp %145 : vector<8x128xf32>
    %cst_26 = arith.constant 1.000000e+00 : f32
    %147 = vector.broadcast %cst_26 : f32 to vector<8x128xf32>
    %148 = arith.addf %147, %146 : vector<8x128xf32>
    %149 = arith.divf %147, %148 : vector<8x128xf32>
    %150 = arith.mulf %149, %8 : vector<8x128xf32>
    %151 = arith.addf %150, %11 : vector<8x128xf32>
    %152 = vector.extract_strided_slice %151 {offsets = [0, 0], sizes = [8, 32], strides = [1, 1]} : vector<8x128xf32> to vector<8x32xf32>
    %153 = vector.extract_strided_slice %151 {offsets = [0, 32], sizes = [8, 32], strides = [1, 1]} : vector<8x128xf32> to vector<8x32xf32>
    %154 = vector.extract_strided_slice %151 {offsets = [0, 64], sizes = [8, 32], strides = [1, 1]} : vector<8x128xf32> to vector<8x32xf32>
    %155 = vector.extract_strided_slice %151 {offsets = [0, 96], sizes = [8, 32], strides = [1, 1]} : vector<8x128xf32> to vector<8x32xf32>
    %156 = arith.mulf %153, %137 : vector<8x32xf32>
    %157 = arith.mulf %152, %154 : vector<8x32xf32>
    %158 = arith.addf %156, %157 : vector<8x32xf32>
    %159 = math.tanh %158 : vector<8x32xf32>
    %160 = arith.mulf %155, %159 : vector<8x32xf32>
    %c56 = arith.constant 56 : index
    %c0_27 = arith.constant 0 : index
    %161 = vector.load %arg0[%c56, %c0_27] : memref<64x128xf32, #tpu.memory_space<vmem>>, vector<8x128xf32>
    %162 = arith.truncf %160 : vector<8x32xf32> to vector<8x32xbf16>
    %cst_28 = arith.constant dense<0.000000e+00> : vector<8x128xf32>
    %163 = tpu.matmul %162, %13, %cst_28 {dimension_numbers = #tpu.dot_dimension_numbers<[1], [0], [0], [1], [0, 0, 1, 1], [], []>} : vector<8x32xbf16>, vector<32x128xbf16>, vector<8x128xf32> -> vector<8x128xf32>
    %164 = arith.addf %161, %163 : vector<8x128xf32>
    %165 = arith.mulf %164, %8 : vector<8x128xf32>
    %166 = arith.negf %165 : vector<8x128xf32>
    %167 = math.exp %166 : vector<8x128xf32>
    %cst_29 = arith.constant 1.000000e+00 : f32
    %168 = vector.broadcast %cst_29 : f32 to vector<8x128xf32>
    %169 = arith.addf %168, %167 : vector<8x128xf32>
    %170 = arith.divf %168, %169 : vector<8x128xf32>
    %171 = arith.mulf %170, %8 : vector<8x128xf32>
    %172 = arith.addf %171, %11 : vector<8x128xf32>
    %173 = vector.extract_strided_slice %172 {offsets = [0, 0], sizes = [8, 32], strides = [1, 1]} : vector<8x128xf32> to vector<8x32xf32>
    %174 = vector.extract_strided_slice %172 {offsets = [0, 32], sizes = [8, 32], strides = [1, 1]} : vector<8x128xf32> to vector<8x32xf32>
    %175 = vector.extract_strided_slice %172 {offsets = [0, 64], sizes = [8, 32], strides = [1, 1]} : vector<8x128xf32> to vector<8x32xf32>
    %176 = vector.extract_strided_slice %172 {offsets = [0, 96], sizes = [8, 32], strides = [1, 1]} : vector<8x128xf32> to vector<8x32xf32>
    %177 = arith.mulf %174, %158 : vector<8x32xf32>
    %178 = arith.mulf %173, %175 : vector<8x32xf32>
    %179 = arith.addf %177, %178 : vector<8x32xf32>
    %180 = math.tanh %179 : vector<8x32xf32>
    %181 = arith.mulf %176, %180 : vector<8x32xf32>
    %c0_30 = arith.constant 0 : index
    %c0_31 = arith.constant 0 : index
    %c0_32 = arith.constant 0 : index
    %182 = vector.load %arg2[%c0_30, %c0_31, %c0_32] : memref<2x32x128xbf16, #tpu.memory_space<vmem>>, vector<1x32x128xbf16>
    %183 = vector.shape_cast %182 : vector<1x32x128xbf16> to vector<32x128xbf16>
    %c0_33 = arith.constant 0 : index
    %c0_34 = arith.constant 0 : index
    %c0_35 = arith.constant 0 : index
    %184 = vector.load %arg3[%c0_33, %c0_34, %c0_35] : memref<2x32x128xbf16, #tpu.memory_space<vmem>>, vector<1x32x128xbf16>
    %185 = vector.shape_cast %184 : vector<1x32x128xbf16> to vector<32x128xbf16>
    %c0_36 = arith.constant 0 : index
    %c0_37 = arith.constant 0 : index
    %c0_38 = arith.constant 0 : index
    %186 = vector.load %arg4[%c0_36, %c0_37, %c0_38] : memref<2x1x128xf32, #tpu.memory_space<vmem>>, vector<1x1x128xf32>
    %187 = vector.shape_cast %186 : vector<1x1x128xf32> to vector<1x128xf32>
    %188 = arith.truncf %34 : vector<8x32xf32> to vector<8x32xbf16>
    %cst_39 = arith.constant dense<0.000000e+00> : vector<8x128xf32>
    %189 = tpu.matmul %188, %183, %cst_39 {dimension_numbers = #tpu.dot_dimension_numbers<[1], [0], [0], [1], [0, 0, 1, 1], [], []>} : vector<8x32xbf16>, vector<32x128xbf16>, vector<8x128xf32> -> vector<8x128xf32>
    %190 = arith.truncf %12 : vector<8x32xf32> to vector<8x32xbf16>
    %cst_40 = arith.constant dense<0.000000e+00> : vector<8x128xf32>
    %191 = tpu.matmul %190, %185, %cst_40 {dimension_numbers = #tpu.dot_dimension_numbers<[1], [0], [0], [1], [0, 0, 1, 1], [], []>} : vector<8x32xbf16>, vector<32x128xbf16>, vector<8x128xf32> -> vector<8x128xf32>
    %192 = arith.addf %189, %191 : vector<8x128xf32>
    %193 = vector.broadcast %187 : vector<1x128xf32> to vector<8x128xf32>
    %194 = arith.addf %192, %193 : vector<8x128xf32>
    %195 = arith.mulf %194, %8 : vector<8x128xf32>
    %196 = arith.negf %195 : vector<8x128xf32>
    %197 = math.exp %196 : vector<8x128xf32>
    %cst_41 = arith.constant 1.000000e+00 : f32
    %198 = vector.broadcast %cst_41 : f32 to vector<8x128xf32>
    %199 = arith.addf %198, %197 : vector<8x128xf32>
    %200 = arith.divf %198, %199 : vector<8x128xf32>
    %201 = arith.mulf %200, %8 : vector<8x128xf32>
    %202 = arith.addf %201, %11 : vector<8x128xf32>
    %203 = vector.extract_strided_slice %202 {offsets = [0, 0], sizes = [8, 32], strides = [1, 1]} : vector<8x128xf32> to vector<8x32xf32>
    %204 = vector.extract_strided_slice %202 {offsets = [0, 32], sizes = [8, 32], strides = [1, 1]} : vector<8x128xf32> to vector<8x32xf32>
    %205 = vector.extract_strided_slice %202 {offsets = [0, 64], sizes = [8, 32], strides = [1, 1]} : vector<8x128xf32> to vector<8x32xf32>
    %206 = vector.extract_strided_slice %202 {offsets = [0, 96], sizes = [8, 32], strides = [1, 1]} : vector<8x128xf32> to vector<8x32xf32>
    %207 = arith.mulf %204, %12 : vector<8x32xf32>
    %208 = arith.mulf %203, %205 : vector<8x32xf32>
    %209 = arith.addf %207, %208 : vector<8x32xf32>
    %210 = math.tanh %209 : vector<8x32xf32>
    %211 = arith.mulf %206, %210 : vector<8x32xf32>
    %212 = arith.truncf %55 : vector<8x32xf32> to vector<8x32xbf16>
    %cst_42 = arith.constant dense<0.000000e+00> : vector<8x128xf32>
    %213 = tpu.matmul %212, %183, %cst_42 {dimension_numbers = #tpu.dot_dimension_numbers<[1], [0], [0], [1], [0, 0, 1, 1], [], []>} : vector<8x32xbf16>, vector<32x128xbf16>, vector<8x128xf32> -> vector<8x128xf32>
    %214 = arith.truncf %211 : vector<8x32xf32> to vector<8x32xbf16>
    %cst_43 = arith.constant dense<0.000000e+00> : vector<8x128xf32>
    %215 = tpu.matmul %214, %185, %cst_43 {dimension_numbers = #tpu.dot_dimension_numbers<[1], [0], [0], [1], [0, 0, 1, 1], [], []>} : vector<8x32xbf16>, vector<32x128xbf16>, vector<8x128xf32> -> vector<8x128xf32>
    %216 = arith.addf %213, %215 : vector<8x128xf32>
    %217 = vector.broadcast %187 : vector<1x128xf32> to vector<8x128xf32>
    %218 = arith.addf %216, %217 : vector<8x128xf32>
    %219 = arith.mulf %218, %8 : vector<8x128xf32>
    %220 = arith.negf %219 : vector<8x128xf32>
    %221 = math.exp %220 : vector<8x128xf32>
    %cst_44 = arith.constant 1.000000e+00 : f32
    %222 = vector.broadcast %cst_44 : f32 to vector<8x128xf32>
    %223 = arith.addf %222, %221 : vector<8x128xf32>
    %224 = arith.divf %222, %223 : vector<8x128xf32>
    %225 = arith.mulf %224, %8 : vector<8x128xf32>
    %226 = arith.addf %225, %11 : vector<8x128xf32>
    %227 = vector.extract_strided_slice %226 {offsets = [0, 0], sizes = [8, 32], strides = [1, 1]} : vector<8x128xf32> to vector<8x32xf32>
    %228 = vector.extract_strided_slice %226 {offsets = [0, 32], sizes = [8, 32], strides = [1, 1]} : vector<8x128xf32> to vector<8x32xf32>
    %229 = vector.extract_strided_slice %226 {offsets = [0, 64], sizes = [8, 32], strides = [1, 1]} : vector<8x128xf32> to vector<8x32xf32>
    %230 = vector.extract_strided_slice %226 {offsets = [0, 96], sizes = [8, 32], strides = [1, 1]} : vector<8x128xf32> to vector<8x32xf32>
    %231 = arith.mulf %228, %209 : vector<8x32xf32>
    %232 = arith.mulf %227, %229 : vector<8x32xf32>
    %233 = arith.addf %231, %232 : vector<8x32xf32>
    %234 = math.tanh %233 : vector<8x32xf32>
    %235 = arith.mulf %230, %234 : vector<8x32xf32>
    %236 = arith.truncf %76 : vector<8x32xf32> to vector<8x32xbf16>
    %cst_45 = arith.constant dense<0.000000e+00> : vector<8x128xf32>
    %237 = tpu.matmul %236, %183, %cst_45 {dimension_numbers = #tpu.dot_dimension_numbers<[1], [0], [0], [1], [0, 0, 1, 1], [], []>} : vector<8x32xbf16>, vector<32x128xbf16>, vector<8x128xf32> -> vector<8x128xf32>
    %238 = arith.truncf %235 : vector<8x32xf32> to vector<8x32xbf16>
    %cst_46 = arith.constant dense<0.000000e+00> : vector<8x128xf32>
    %239 = tpu.matmul %238, %185, %cst_46 {dimension_numbers = #tpu.dot_dimension_numbers<[1], [0], [0], [1], [0, 0, 1, 1], [], []>} : vector<8x32xbf16>, vector<32x128xbf16>, vector<8x128xf32> -> vector<8x128xf32>
    %240 = arith.addf %237, %239 : vector<8x128xf32>
    %241 = vector.broadcast %187 : vector<1x128xf32> to vector<8x128xf32>
    %242 = arith.addf %240, %241 : vector<8x128xf32>
    %243 = arith.mulf %242, %8 : vector<8x128xf32>
    %244 = arith.negf %243 : vector<8x128xf32>
    %245 = math.exp %244 : vector<8x128xf32>
    %cst_47 = arith.constant 1.000000e+00 : f32
    %246 = vector.broadcast %cst_47 : f32 to vector<8x128xf32>
    %247 = arith.addf %246, %245 : vector<8x128xf32>
    %248 = arith.divf %246, %247 : vector<8x128xf32>
    %249 = arith.mulf %248, %8 : vector<8x128xf32>
    %250 = arith.addf %249, %11 : vector<8x128xf32>
    %251 = vector.extract_strided_slice %250 {offsets = [0, 0], sizes = [8, 32], strides = [1, 1]} : vector<8x128xf32> to vector<8x32xf32>
    %252 = vector.extract_strided_slice %250 {offsets = [0, 32], sizes = [8, 32], strides = [1, 1]} : vector<8x128xf32> to vector<8x32xf32>
    %253 = vector.extract_strided_slice %250 {offsets = [0, 64], sizes = [8, 32], strides = [1, 1]} : vector<8x128xf32> to vector<8x32xf32>
    %254 = vector.extract_strided_slice %250 {offsets = [0, 96], sizes = [8, 32], strides = [1, 1]} : vector<8x128xf32> to vector<8x32xf32>
    %255 = arith.mulf %252, %233 : vector<8x32xf32>
    %256 = arith.mulf %251, %253 : vector<8x32xf32>
    %257 = arith.addf %255, %256 : vector<8x32xf32>
    %258 = math.tanh %257 : vector<8x32xf32>
    %259 = arith.mulf %254, %258 : vector<8x32xf32>
    %260 = arith.truncf %97 : vector<8x32xf32> to vector<8x32xbf16>
    %cst_48 = arith.constant dense<0.000000e+00> : vector<8x128xf32>
    %261 = tpu.matmul %260, %183, %cst_48 {dimension_numbers = #tpu.dot_dimension_numbers<[1], [0], [0], [1], [0, 0, 1, 1], [], []>} : vector<8x32xbf16>, vector<32x128xbf16>, vector<8x128xf32> -> vector<8x128xf32>
    %262 = arith.truncf %259 : vector<8x32xf32> to vector<8x32xbf16>
    %cst_49 = arith.constant dense<0.000000e+00> : vector<8x128xf32>
    %263 = tpu.matmul %262, %185, %cst_49 {dimension_numbers = #tpu.dot_dimension_numbers<[1], [0], [0], [1], [0, 0, 1, 1], [], []>} : vector<8x32xbf16>, vector<32x128xbf16>, vector<8x128xf32> -> vector<8x128xf32>
    %264 = arith.addf %261, %263 : vector<8x128xf32>
    %265 = vector.broadcast %187 : vector<1x128xf32> to vector<8x128xf32>
    %266 = arith.addf %264, %265 : vector<8x128xf32>
    %267 = arith.mulf %266, %8 : vector<8x128xf32>
    %268 = arith.negf %267 : vector<8x128xf32>
    %269 = math.exp %268 : vector<8x128xf32>
    %cst_50 = arith.constant 1.000000e+00 : f32
    %270 = vector.broadcast %cst_50 : f32 to vector<8x128xf32>
    %271 = arith.addf %270, %269 : vector<8x128xf32>
    %272 = arith.divf %270, %271 : vector<8x128xf32>
    %273 = arith.mulf %272, %8 : vector<8x128xf32>
    %274 = arith.addf %273, %11 : vector<8x128xf32>
    %275 = vector.extract_strided_slice %274 {offsets = [0, 0], sizes = [8, 32], strides = [1, 1]} : vector<8x128xf32> to vector<8x32xf32>
    %276 = vector.extract_strided_slice %274 {offsets = [0, 32], sizes = [8, 32], strides = [1, 1]} : vector<8x128xf32> to vector<8x32xf32>
    %277 = vector.extract_strided_slice %274 {offsets = [0, 64], sizes = [8, 32], strides = [1, 1]} : vector<8x128xf32> to vector<8x32xf32>
    %278 = vector.extract_strided_slice %274 {offsets = [0, 96], sizes = [8, 32], strides = [1, 1]} : vector<8x128xf32> to vector<8x32xf32>
    %279 = arith.mulf %276, %257 : vector<8x32xf32>
    %280 = arith.mulf %275, %277 : vector<8x32xf32>
    %281 = arith.addf %279, %280 : vector<8x32xf32>
    %282 = math.tanh %281 : vector<8x32xf32>
    %283 = arith.mulf %278, %282 : vector<8x32xf32>
    %284 = arith.truncf %118 : vector<8x32xf32> to vector<8x32xbf16>
    %cst_51 = arith.constant dense<0.000000e+00> : vector<8x128xf32>
    %285 = tpu.matmul %284, %183, %cst_51 {dimension_numbers = #tpu.dot_dimension_numbers<[1], [0], [0], [1], [0, 0, 1, 1], [], []>} : vector<8x32xbf16>, vector<32x128xbf16>, vector<8x128xf32> -> vector<8x128xf32>
    %286 = arith.truncf %283 : vector<8x32xf32> to vector<8x32xbf16>
    %cst_52 = arith.constant dense<0.000000e+00> : vector<8x128xf32>
    %287 = tpu.matmul %286, %185, %cst_52 {dimension_numbers = #tpu.dot_dimension_numbers<[1], [0], [0], [1], [0, 0, 1, 1], [], []>} : vector<8x32xbf16>, vector<32x128xbf16>, vector<8x128xf32> -> vector<8x128xf32>
    %288 = arith.addf %285, %287 : vector<8x128xf32>
    %289 = vector.broadcast %187 : vector<1x128xf32> to vector<8x128xf32>
    %290 = arith.addf %288, %289 : vector<8x128xf32>
    %291 = arith.mulf %290, %8 : vector<8x128xf32>
    %292 = arith.negf %291 : vector<8x128xf32>
    %293 = math.exp %292 : vector<8x128xf32>
    %cst_53 = arith.constant 1.000000e+00 : f32
    %294 = vector.broadcast %cst_53 : f32 to vector<8x128xf32>
    %295 = arith.addf %294, %293 : vector<8x128xf32>
    %296 = arith.divf %294, %295 : vector<8x128xf32>
    %297 = arith.mulf %296, %8 : vector<8x128xf32>
    %298 = arith.addf %297, %11 : vector<8x128xf32>
    %299 = vector.extract_strided_slice %298 {offsets = [0, 0], sizes = [8, 32], strides = [1, 1]} : vector<8x128xf32> to vector<8x32xf32>
    %300 = vector.extract_strided_slice %298 {offsets = [0, 32], sizes = [8, 32], strides = [1, 1]} : vector<8x128xf32> to vector<8x32xf32>
    %301 = vector.extract_strided_slice %298 {offsets = [0, 64], sizes = [8, 32], strides = [1, 1]} : vector<8x128xf32> to vector<8x32xf32>
    %302 = vector.extract_strided_slice %298 {offsets = [0, 96], sizes = [8, 32], strides = [1, 1]} : vector<8x128xf32> to vector<8x32xf32>
    %303 = arith.mulf %300, %281 : vector<8x32xf32>
    %304 = arith.mulf %299, %301 : vector<8x32xf32>
    %305 = arith.addf %303, %304 : vector<8x32xf32>
    %306 = math.tanh %305 : vector<8x32xf32>
    %307 = arith.mulf %302, %306 : vector<8x32xf32>
    %308 = arith.truncf %139 : vector<8x32xf32> to vector<8x32xbf16>
    %cst_54 = arith.constant dense<0.000000e+00> : vector<8x128xf32>
    %309 = tpu.matmul %308, %183, %cst_54 {dimension_numbers = #tpu.dot_dimension_numbers<[1], [0], [0], [1], [0, 0, 1, 1], [], []>} : vector<8x32xbf16>, vector<32x128xbf16>, vector<8x128xf32> -> vector<8x128xf32>
    %310 = arith.truncf %307 : vector<8x32xf32> to vector<8x32xbf16>
    %cst_55 = arith.constant dense<0.000000e+00> : vector<8x128xf32>
    %311 = tpu.matmul %310, %185, %cst_55 {dimension_numbers = #tpu.dot_dimension_numbers<[1], [0], [0], [1], [0, 0, 1, 1], [], []>} : vector<8x32xbf16>, vector<32x128xbf16>, vector<8x128xf32> -> vector<8x128xf32>
    %312 = arith.addf %309, %311 : vector<8x128xf32>
    %313 = vector.broadcast %187 : vector<1x128xf32> to vector<8x128xf32>
    %314 = arith.addf %312, %313 : vector<8x128xf32>
    %315 = arith.mulf %314, %8 : vector<8x128xf32>
    %316 = arith.negf %315 : vector<8x128xf32>
    %317 = math.exp %316 : vector<8x128xf32>
    %cst_56 = arith.constant 1.000000e+00 : f32
    %318 = vector.broadcast %cst_56 : f32 to vector<8x128xf32>
    %319 = arith.addf %318, %317 : vector<8x128xf32>
    %320 = arith.divf %318, %319 : vector<8x128xf32>
    %321 = arith.mulf %320, %8 : vector<8x128xf32>
    %322 = arith.addf %321, %11 : vector<8x128xf32>
    %323 = vector.extract_strided_slice %322 {offsets = [0, 0], sizes = [8, 32], strides = [1, 1]} : vector<8x128xf32> to vector<8x32xf32>
    %324 = vector.extract_strided_slice %322 {offsets = [0, 32], sizes = [8, 32], strides = [1, 1]} : vector<8x128xf32> to vector<8x32xf32>
    %325 = vector.extract_strided_slice %322 {offsets = [0, 64], sizes = [8, 32], strides = [1, 1]} : vector<8x128xf32> to vector<8x32xf32>
    %326 = vector.extract_strided_slice %322 {offsets = [0, 96], sizes = [8, 32], strides = [1, 1]} : vector<8x128xf32> to vector<8x32xf32>
    %327 = arith.mulf %324, %305 : vector<8x32xf32>
    %328 = arith.mulf %323, %325 : vector<8x32xf32>
    %329 = arith.addf %327, %328 : vector<8x32xf32>
    %330 = math.tanh %329 : vector<8x32xf32>
    %331 = arith.mulf %326, %330 : vector<8x32xf32>
    %332 = arith.truncf %160 : vector<8x32xf32> to vector<8x32xbf16>
    %cst_57 = arith.constant dense<0.000000e+00> : vector<8x128xf32>
    %333 = tpu.matmul %332, %183, %cst_57 {dimension_numbers = #tpu.dot_dimension_numbers<[1], [0], [0], [1], [0, 0, 1, 1], [], []>} : vector<8x32xbf16>, vector<32x128xbf16>, vector<8x128xf32> -> vector<8x128xf32>
    %334 = arith.truncf %331 : vector<8x32xf32> to vector<8x32xbf16>
    %cst_58 = arith.constant dense<0.000000e+00> : vector<8x128xf32>
    %335 = tpu.matmul %334, %185, %cst_58 {dimension_numbers = #tpu.dot_dimension_numbers<[1], [0], [0], [1], [0, 0, 1, 1], [], []>} : vector<8x32xbf16>, vector<32x128xbf16>, vector<8x128xf32> -> vector<8x128xf32>
    %336 = arith.addf %333, %335 : vector<8x128xf32>
    %337 = vector.broadcast %187 : vector<1x128xf32> to vector<8x128xf32>
    %338 = arith.addf %336, %337 : vector<8x128xf32>
    %339 = arith.mulf %338, %8 : vector<8x128xf32>
    %340 = arith.negf %339 : vector<8x128xf32>
    %341 = math.exp %340 : vector<8x128xf32>
    %cst_59 = arith.constant 1.000000e+00 : f32
    %342 = vector.broadcast %cst_59 : f32 to vector<8x128xf32>
    %343 = arith.addf %342, %341 : vector<8x128xf32>
    %344 = arith.divf %342, %343 : vector<8x128xf32>
    %345 = arith.mulf %344, %8 : vector<8x128xf32>
    %346 = arith.addf %345, %11 : vector<8x128xf32>
    %347 = vector.extract_strided_slice %346 {offsets = [0, 0], sizes = [8, 32], strides = [1, 1]} : vector<8x128xf32> to vector<8x32xf32>
    %348 = vector.extract_strided_slice %346 {offsets = [0, 32], sizes = [8, 32], strides = [1, 1]} : vector<8x128xf32> to vector<8x32xf32>
    %349 = vector.extract_strided_slice %346 {offsets = [0, 64], sizes = [8, 32], strides = [1, 1]} : vector<8x128xf32> to vector<8x32xf32>
    %350 = vector.extract_strided_slice %346 {offsets = [0, 96], sizes = [8, 32], strides = [1, 1]} : vector<8x128xf32> to vector<8x32xf32>
    %351 = arith.mulf %348, %329 : vector<8x32xf32>
    %352 = arith.mulf %347, %349 : vector<8x32xf32>
    %353 = arith.addf %351, %352 : vector<8x32xf32>
    %354 = math.tanh %353 : vector<8x32xf32>
    %355 = arith.mulf %350, %354 : vector<8x32xf32>
    %356 = arith.truncf %181 : vector<8x32xf32> to vector<8x32xbf16>
    %cst_60 = arith.constant dense<0.000000e+00> : vector<8x128xf32>
    %357 = tpu.matmul %356, %183, %cst_60 {dimension_numbers = #tpu.dot_dimension_numbers<[1], [0], [0], [1], [0, 0, 1, 1], [], []>} : vector<8x32xbf16>, vector<32x128xbf16>, vector<8x128xf32> -> vector<8x128xf32>
    %358 = arith.truncf %355 : vector<8x32xf32> to vector<8x32xbf16>
    %cst_61 = arith.constant dense<0.000000e+00> : vector<8x128xf32>
    %359 = tpu.matmul %358, %185, %cst_61 {dimension_numbers = #tpu.dot_dimension_numbers<[1], [0], [0], [1], [0, 0, 1, 1], [], []>} : vector<8x32xbf16>, vector<32x128xbf16>, vector<8x128xf32> -> vector<8x128xf32>
    %360 = arith.addf %357, %359 : vector<8x128xf32>
    %361 = vector.broadcast %187 : vector<1x128xf32> to vector<8x128xf32>
    %362 = arith.addf %360, %361 : vector<8x128xf32>
    %363 = arith.mulf %362, %8 : vector<8x128xf32>
    %364 = arith.negf %363 : vector<8x128xf32>
    %365 = math.exp %364 : vector<8x128xf32>
    %cst_62 = arith.constant 1.000000e+00 : f32
    %366 = vector.broadcast %cst_62 : f32 to vector<8x128xf32>
    %367 = arith.addf %366, %365 : vector<8x128xf32>
    %368 = arith.divf %366, %367 : vector<8x128xf32>
    %369 = arith.mulf %368, %8 : vector<8x128xf32>
    %370 = arith.addf %369, %11 : vector<8x128xf32>
    %371 = vector.extract_strided_slice %370 {offsets = [0, 0], sizes = [8, 32], strides = [1, 1]} : vector<8x128xf32> to vector<8x32xf32>
    %372 = vector.extract_strided_slice %370 {offsets = [0, 32], sizes = [8, 32], strides = [1, 1]} : vector<8x128xf32> to vector<8x32xf32>
    %373 = vector.extract_strided_slice %370 {offsets = [0, 64], sizes = [8, 32], strides = [1, 1]} : vector<8x128xf32> to vector<8x32xf32>
    %374 = vector.extract_strided_slice %370 {offsets = [0, 96], sizes = [8, 32], strides = [1, 1]} : vector<8x128xf32> to vector<8x32xf32>
    %375 = arith.mulf %372, %353 : vector<8x32xf32>
    %376 = arith.mulf %371, %373 : vector<8x32xf32>
    %377 = arith.addf %375, %376 : vector<8x32xf32>
    %378 = math.tanh %377 : vector<8x32xf32>
    %379 = arith.mulf %374, %378 : vector<8x32xf32>
    %c1 = arith.constant 1 : index
    %c0_63 = arith.constant 0 : index
    %c0_64 = arith.constant 0 : index
    %380 = vector.load %arg2[%c1, %c0_63, %c0_64] : memref<2x32x128xbf16, #tpu.memory_space<vmem>>, vector<1x32x128xbf16>
    %381 = vector.shape_cast %380 : vector<1x32x128xbf16> to vector<32x128xbf16>
    %c1_65 = arith.constant 1 : index
    %c0_66 = arith.constant 0 : index
    %c0_67 = arith.constant 0 : index
    %382 = vector.load %arg3[%c1_65, %c0_66, %c0_67] : memref<2x32x128xbf16, #tpu.memory_space<vmem>>, vector<1x32x128xbf16>
    %383 = vector.shape_cast %382 : vector<1x32x128xbf16> to vector<32x128xbf16>
    %c1_68 = arith.constant 1 : index
    %c0_69 = arith.constant 0 : index
    %c0_70 = arith.constant 0 : index
    %384 = vector.load %arg4[%c1_68, %c0_69, %c0_70] : memref<2x1x128xf32, #tpu.memory_space<vmem>>, vector<1x1x128xf32>
    %385 = vector.shape_cast %384 : vector<1x1x128xf32> to vector<1x128xf32>
    %386 = arith.truncf %211 : vector<8x32xf32> to vector<8x32xbf16>
    %cst_71 = arith.constant dense<0.000000e+00> : vector<8x128xf32>
    %387 = tpu.matmul %386, %381, %cst_71 {dimension_numbers = #tpu.dot_dimension_numbers<[1], [0], [0], [1], [0, 0, 1, 1], [], []>} : vector<8x32xbf16>, vector<32x128xbf16>, vector<8x128xf32> -> vector<8x128xf32>
    %388 = arith.truncf %12 : vector<8x32xf32> to vector<8x32xbf16>
    %cst_72 = arith.constant dense<0.000000e+00> : vector<8x128xf32>
    %389 = tpu.matmul %388, %383, %cst_72 {dimension_numbers = #tpu.dot_dimension_numbers<[1], [0], [0], [1], [0, 0, 1, 1], [], []>} : vector<8x32xbf16>, vector<32x128xbf16>, vector<8x128xf32> -> vector<8x128xf32>
    %390 = arith.addf %387, %389 : vector<8x128xf32>
    %391 = vector.broadcast %385 : vector<1x128xf32> to vector<8x128xf32>
    %392 = arith.addf %390, %391 : vector<8x128xf32>
    %393 = arith.mulf %392, %8 : vector<8x128xf32>
    %394 = arith.negf %393 : vector<8x128xf32>
    %395 = math.exp %394 : vector<8x128xf32>
    %cst_73 = arith.constant 1.000000e+00 : f32
    %396 = vector.broadcast %cst_73 : f32 to vector<8x128xf32>
    %397 = arith.addf %396, %395 : vector<8x128xf32>
    %398 = arith.divf %396, %397 : vector<8x128xf32>
    %399 = arith.mulf %398, %8 : vector<8x128xf32>
    %400 = arith.addf %399, %11 : vector<8x128xf32>
    %401 = vector.extract_strided_slice %400 {offsets = [0, 0], sizes = [8, 32], strides = [1, 1]} : vector<8x128xf32> to vector<8x32xf32>
    %402 = vector.extract_strided_slice %400 {offsets = [0, 32], sizes = [8, 32], strides = [1, 1]} : vector<8x128xf32> to vector<8x32xf32>
    %403 = vector.extract_strided_slice %400 {offsets = [0, 64], sizes = [8, 32], strides = [1, 1]} : vector<8x128xf32> to vector<8x32xf32>
    %404 = vector.extract_strided_slice %400 {offsets = [0, 96], sizes = [8, 32], strides = [1, 1]} : vector<8x128xf32> to vector<8x32xf32>
    %405 = arith.mulf %402, %12 : vector<8x32xf32>
    %406 = arith.mulf %401, %403 : vector<8x32xf32>
    %407 = arith.addf %405, %406 : vector<8x32xf32>
    %408 = math.tanh %407 : vector<8x32xf32>
    %409 = arith.mulf %404, %408 : vector<8x32xf32>
    %410 = arith.truncf %235 : vector<8x32xf32> to vector<8x32xbf16>
    %cst_74 = arith.constant dense<0.000000e+00> : vector<8x128xf32>
    %411 = tpu.matmul %410, %381, %cst_74 {dimension_numbers = #tpu.dot_dimension_numbers<[1], [0], [0], [1], [0, 0, 1, 1], [], []>} : vector<8x32xbf16>, vector<32x128xbf16>, vector<8x128xf32> -> vector<8x128xf32>
    %412 = arith.truncf %409 : vector<8x32xf32> to vector<8x32xbf16>
    %cst_75 = arith.constant dense<0.000000e+00> : vector<8x128xf32>
    %413 = tpu.matmul %412, %383, %cst_75 {dimension_numbers = #tpu.dot_dimension_numbers<[1], [0], [0], [1], [0, 0, 1, 1], [], []>} : vector<8x32xbf16>, vector<32x128xbf16>, vector<8x128xf32> -> vector<8x128xf32>
    %414 = arith.addf %411, %413 : vector<8x128xf32>
    %415 = vector.broadcast %385 : vector<1x128xf32> to vector<8x128xf32>
    %416 = arith.addf %414, %415 : vector<8x128xf32>
    %417 = arith.mulf %416, %8 : vector<8x128xf32>
    %418 = arith.negf %417 : vector<8x128xf32>
    %419 = math.exp %418 : vector<8x128xf32>
    %cst_76 = arith.constant 1.000000e+00 : f32
    %420 = vector.broadcast %cst_76 : f32 to vector<8x128xf32>
    %421 = arith.addf %420, %419 : vector<8x128xf32>
    %422 = arith.divf %420, %421 : vector<8x128xf32>
    %423 = arith.mulf %422, %8 : vector<8x128xf32>
    %424 = arith.addf %423, %11 : vector<8x128xf32>
    %425 = vector.extract_strided_slice %424 {offsets = [0, 0], sizes = [8, 32], strides = [1, 1]} : vector<8x128xf32> to vector<8x32xf32>
    %426 = vector.extract_strided_slice %424 {offsets = [0, 32], sizes = [8, 32], strides = [1, 1]} : vector<8x128xf32> to vector<8x32xf32>
    %427 = vector.extract_strided_slice %424 {offsets = [0, 64], sizes = [8, 32], strides = [1, 1]} : vector<8x128xf32> to vector<8x32xf32>
    %428 = vector.extract_strided_slice %424 {offsets = [0, 96], sizes = [8, 32], strides = [1, 1]} : vector<8x128xf32> to vector<8x32xf32>
    %429 = arith.mulf %426, %407 : vector<8x32xf32>
    %430 = arith.mulf %425, %427 : vector<8x32xf32>
    %431 = arith.addf %429, %430 : vector<8x32xf32>
    %432 = math.tanh %431 : vector<8x32xf32>
    %433 = arith.mulf %428, %432 : vector<8x32xf32>
    %434 = arith.truncf %259 : vector<8x32xf32> to vector<8x32xbf16>
    %cst_77 = arith.constant dense<0.000000e+00> : vector<8x128xf32>
    %435 = tpu.matmul %434, %381, %cst_77 {dimension_numbers = #tpu.dot_dimension_numbers<[1], [0], [0], [1], [0, 0, 1, 1], [], []>} : vector<8x32xbf16>, vector<32x128xbf16>, vector<8x128xf32> -> vector<8x128xf32>
    %436 = arith.truncf %433 : vector<8x32xf32> to vector<8x32xbf16>
    %cst_78 = arith.constant dense<0.000000e+00> : vector<8x128xf32>
    %437 = tpu.matmul %436, %383, %cst_78 {dimension_numbers = #tpu.dot_dimension_numbers<[1], [0], [0], [1], [0, 0, 1, 1], [], []>} : vector<8x32xbf16>, vector<32x128xbf16>, vector<8x128xf32> -> vector<8x128xf32>
    %438 = arith.addf %435, %437 : vector<8x128xf32>
    %439 = vector.broadcast %385 : vector<1x128xf32> to vector<8x128xf32>
    %440 = arith.addf %438, %439 : vector<8x128xf32>
    %441 = arith.mulf %440, %8 : vector<8x128xf32>
    %442 = arith.negf %441 : vector<8x128xf32>
    %443 = math.exp %442 : vector<8x128xf32>
    %cst_79 = arith.constant 1.000000e+00 : f32
    %444 = vector.broadcast %cst_79 : f32 to vector<8x128xf32>
    %445 = arith.addf %444, %443 : vector<8x128xf32>
    %446 = arith.divf %444, %445 : vector<8x128xf32>
    %447 = arith.mulf %446, %8 : vector<8x128xf32>
    %448 = arith.addf %447, %11 : vector<8x128xf32>
    %449 = vector.extract_strided_slice %448 {offsets = [0, 0], sizes = [8, 32], strides = [1, 1]} : vector<8x128xf32> to vector<8x32xf32>
    %450 = vector.extract_strided_slice %448 {offsets = [0, 32], sizes = [8, 32], strides = [1, 1]} : vector<8x128xf32> to vector<8x32xf32>
    %451 = vector.extract_strided_slice %448 {offsets = [0, 64], sizes = [8, 32], strides = [1, 1]} : vector<8x128xf32> to vector<8x32xf32>
    %452 = vector.extract_strided_slice %448 {offsets = [0, 96], sizes = [8, 32], strides = [1, 1]} : vector<8x128xf32> to vector<8x32xf32>
    %453 = arith.mulf %450, %431 : vector<8x32xf32>
    %454 = arith.mulf %449, %451 : vector<8x32xf32>
    %455 = arith.addf %453, %454 : vector<8x32xf32>
    %456 = math.tanh %455 : vector<8x32xf32>
    %457 = arith.mulf %452, %456 : vector<8x32xf32>
    %458 = arith.truncf %283 : vector<8x32xf32> to vector<8x32xbf16>
    %cst_80 = arith.constant dense<0.000000e+00> : vector<8x128xf32>
    %459 = tpu.matmul %458, %381, %cst_80 {dimension_numbers = #tpu.dot_dimension_numbers<[1], [0], [0], [1], [0, 0, 1, 1], [], []>} : vector<8x32xbf16>, vector<32x128xbf16>, vector<8x128xf32> -> vector<8x128xf32>
    %460 = arith.truncf %457 : vector<8x32xf32> to vector<8x32xbf16>
    %cst_81 = arith.constant dense<0.000000e+00> : vector<8x128xf32>
    %461 = tpu.matmul %460, %383, %cst_81 {dimension_numbers = #tpu.dot_dimension_numbers<[1], [0], [0], [1], [0, 0, 1, 1], [], []>} : vector<8x32xbf16>, vector<32x128xbf16>, vector<8x128xf32> -> vector<8x128xf32>
    %462 = arith.addf %459, %461 : vector<8x128xf32>
    %463 = vector.broadcast %385 : vector<1x128xf32> to vector<8x128xf32>
    %464 = arith.addf %462, %463 : vector<8x128xf32>
    %465 = arith.mulf %464, %8 : vector<8x128xf32>
    %466 = arith.negf %465 : vector<8x128xf32>
    %467 = math.exp %466 : vector<8x128xf32>
    %cst_82 = arith.constant 1.000000e+00 : f32
    %468 = vector.broadcast %cst_82 : f32 to vector<8x128xf32>
    %469 = arith.addf %468, %467 : vector<8x128xf32>
    %470 = arith.divf %468, %469 : vector<8x128xf32>
    %471 = arith.mulf %470, %8 : vector<8x128xf32>
    %472 = arith.addf %471, %11 : vector<8x128xf32>
    %473 = vector.extract_strided_slice %472 {offsets = [0, 0], sizes = [8, 32], strides = [1, 1]} : vector<8x128xf32> to vector<8x32xf32>
    %474 = vector.extract_strided_slice %472 {offsets = [0, 32], sizes = [8, 32], strides = [1, 1]} : vector<8x128xf32> to vector<8x32xf32>
    %475 = vector.extract_strided_slice %472 {offsets = [0, 64], sizes = [8, 32], strides = [1, 1]} : vector<8x128xf32> to vector<8x32xf32>
    %476 = vector.extract_strided_slice %472 {offsets = [0, 96], sizes = [8, 32], strides = [1, 1]} : vector<8x128xf32> to vector<8x32xf32>
    %477 = arith.mulf %474, %455 : vector<8x32xf32>
    %478 = arith.mulf %473, %475 : vector<8x32xf32>
    %479 = arith.addf %477, %478 : vector<8x32xf32>
    %480 = math.tanh %479 : vector<8x32xf32>
    %481 = arith.mulf %476, %480 : vector<8x32xf32>
    %482 = arith.truncf %307 : vector<8x32xf32> to vector<8x32xbf16>
    %cst_83 = arith.constant dense<0.000000e+00> : vector<8x128xf32>
    %483 = tpu.matmul %482, %381, %cst_83 {dimension_numbers = #tpu.dot_dimension_numbers<[1], [0], [0], [1], [0, 0, 1, 1], [], []>} : vector<8x32xbf16>, vector<32x128xbf16>, vector<8x128xf32> -> vector<8x128xf32>
    %484 = arith.truncf %481 : vector<8x32xf32> to vector<8x32xbf16>
    %cst_84 = arith.constant dense<0.000000e+00> : vector<8x128xf32>
    %485 = tpu.matmul %484, %383, %cst_84 {dimension_numbers = #tpu.dot_dimension_numbers<[1], [0], [0], [1], [0, 0, 1, 1], [], []>} : vector<8x32xbf16>, vector<32x128xbf16>, vector<8x128xf32> -> vector<8x128xf32>
    %486 = arith.addf %483, %485 : vector<8x128xf32>
    %487 = vector.broadcast %385 : vector<1x128xf32> to vector<8x128xf32>
    %488 = arith.addf %486, %487 : vector<8x128xf32>
    %489 = arith.mulf %488, %8 : vector<8x128xf32>
    %490 = arith.negf %489 : vector<8x128xf32>
    %491 = math.exp %490 : vector<8x128xf32>
    %cst_85 = arith.constant 1.000000e+00 : f32
    %492 = vector.broadcast %cst_85 : f32 to vector<8x128xf32>
    %493 = arith.addf %492, %491 : vector<8x128xf32>
    %494 = arith.divf %492, %493 : vector<8x128xf32>
    %495 = arith.mulf %494, %8 : vector<8x128xf32>
    %496 = arith.addf %495, %11 : vector<8x128xf32>
    %497 = vector.extract_strided_slice %496 {offsets = [0, 0], sizes = [8, 32], strides = [1, 1]} : vector<8x128xf32> to vector<8x32xf32>
    %498 = vector.extract_strided_slice %496 {offsets = [0, 32], sizes = [8, 32], strides = [1, 1]} : vector<8x128xf32> to vector<8x32xf32>
    %499 = vector.extract_strided_slice %496 {offsets = [0, 64], sizes = [8, 32], strides = [1, 1]} : vector<8x128xf32> to vector<8x32xf32>
    %500 = vector.extract_strided_slice %496 {offsets = [0, 96], sizes = [8, 32], strides = [1, 1]} : vector<8x128xf32> to vector<8x32xf32>
    %501 = arith.mulf %498, %479 : vector<8x32xf32>
    %502 = arith.mulf %497, %499 : vector<8x32xf32>
    %503 = arith.addf %501, %502 : vector<8x32xf32>
    %504 = math.tanh %503 : vector<8x32xf32>
    %505 = arith.mulf %500, %504 : vector<8x32xf32>
    %506 = arith.truncf %331 : vector<8x32xf32> to vector<8x32xbf16>
    %cst_86 = arith.constant dense<0.000000e+00> : vector<8x128xf32>
    %507 = tpu.matmul %506, %381, %cst_86 {dimension_numbers = #tpu.dot_dimension_numbers<[1], [0], [0], [1], [0, 0, 1, 1], [], []>} : vector<8x32xbf16>, vector<32x128xbf16>, vector<8x128xf32> -> vector<8x128xf32>
    %508 = arith.truncf %505 : vector<8x32xf32> to vector<8x32xbf16>
    %cst_87 = arith.constant dense<0.000000e+00> : vector<8x128xf32>
    %509 = tpu.matmul %508, %383, %cst_87 {dimension_numbers = #tpu.dot_dimension_numbers<[1], [0], [0], [1], [0, 0, 1, 1], [], []>} : vector<8x32xbf16>, vector<32x128xbf16>, vector<8x128xf32> -> vector<8x128xf32>
    %510 = arith.addf %507, %509 : vector<8x128xf32>
    %511 = vector.broadcast %385 : vector<1x128xf32> to vector<8x128xf32>
    %512 = arith.addf %510, %511 : vector<8x128xf32>
    %513 = arith.mulf %512, %8 : vector<8x128xf32>
    %514 = arith.negf %513 : vector<8x128xf32>
    %515 = math.exp %514 : vector<8x128xf32>
    %cst_88 = arith.constant 1.000000e+00 : f32
    %516 = vector.broadcast %cst_88 : f32 to vector<8x128xf32>
    %517 = arith.addf %516, %515 : vector<8x128xf32>
    %518 = arith.divf %516, %517 : vector<8x128xf32>
    %519 = arith.mulf %518, %8 : vector<8x128xf32>
    %520 = arith.addf %519, %11 : vector<8x128xf32>
    %521 = vector.extract_strided_slice %520 {offsets = [0, 0], sizes = [8, 32], strides = [1, 1]} : vector<8x128xf32> to vector<8x32xf32>
    %522 = vector.extract_strided_slice %520 {offsets = [0, 32], sizes = [8, 32], strides = [1, 1]} : vector<8x128xf32> to vector<8x32xf32>
    %523 = vector.extract_strided_slice %520 {offsets = [0, 64], sizes = [8, 32], strides = [1, 1]} : vector<8x128xf32> to vector<8x32xf32>
    %524 = vector.extract_strided_slice %520 {offsets = [0, 96], sizes = [8, 32], strides = [1, 1]} : vector<8x128xf32> to vector<8x32xf32>
    %525 = arith.mulf %522, %503 : vector<8x32xf32>
    %526 = arith.mulf %521, %523 : vector<8x32xf32>
    %527 = arith.addf %525, %526 : vector<8x32xf32>
    %528 = math.tanh %527 : vector<8x32xf32>
    %529 = arith.mulf %524, %528 : vector<8x32xf32>
    %530 = arith.truncf %355 : vector<8x32xf32> to vector<8x32xbf16>
    %cst_89 = arith.constant dense<0.000000e+00> : vector<8x128xf32>
    %531 = tpu.matmul %530, %381, %cst_89 {dimension_numbers = #tpu.dot_dimension_numbers<[1], [0], [0], [1], [0, 0, 1, 1], [], []>} : vector<8x32xbf16>, vector<32x128xbf16>, vector<8x128xf32> -> vector<8x128xf32>
    %532 = arith.truncf %529 : vector<8x32xf32> to vector<8x32xbf16>
    %cst_90 = arith.constant dense<0.000000e+00> : vector<8x128xf32>
    %533 = tpu.matmul %532, %383, %cst_90 {dimension_numbers = #tpu.dot_dimension_numbers<[1], [0], [0], [1], [0, 0, 1, 1], [], []>} : vector<8x32xbf16>, vector<32x128xbf16>, vector<8x128xf32> -> vector<8x128xf32>
    %534 = arith.addf %531, %533 : vector<8x128xf32>
    %535 = vector.broadcast %385 : vector<1x128xf32> to vector<8x128xf32>
    %536 = arith.addf %534, %535 : vector<8x128xf32>
    %537 = arith.mulf %536, %8 : vector<8x128xf32>
    %538 = arith.negf %537 : vector<8x128xf32>
    %539 = math.exp %538 : vector<8x128xf32>
    %cst_91 = arith.constant 1.000000e+00 : f32
    %540 = vector.broadcast %cst_91 : f32 to vector<8x128xf32>
    %541 = arith.addf %540, %539 : vector<8x128xf32>
    %542 = arith.divf %540, %541 : vector<8x128xf32>
    %543 = arith.mulf %542, %8 : vector<8x128xf32>
    %544 = arith.addf %543, %11 : vector<8x128xf32>
    %545 = vector.extract_strided_slice %544 {offsets = [0, 0], sizes = [8, 32], strides = [1, 1]} : vector<8x128xf32> to vector<8x32xf32>
    %546 = vector.extract_strided_slice %544 {offsets = [0, 32], sizes = [8, 32], strides = [1, 1]} : vector<8x128xf32> to vector<8x32xf32>
    %547 = vector.extract_strided_slice %544 {offsets = [0, 64], sizes = [8, 32], strides = [1, 1]} : vector<8x128xf32> to vector<8x32xf32>
    %548 = vector.extract_strided_slice %544 {offsets = [0, 96], sizes = [8, 32], strides = [1, 1]} : vector<8x128xf32> to vector<8x32xf32>
    %549 = arith.mulf %546, %527 : vector<8x32xf32>
    %550 = arith.mulf %545, %547 : vector<8x32xf32>
    %551 = arith.addf %549, %550 : vector<8x32xf32>
    %552 = math.tanh %551 : vector<8x32xf32>
    %553 = arith.mulf %548, %552 : vector<8x32xf32>
    %554 = arith.truncf %379 : vector<8x32xf32> to vector<8x32xbf16>
    %cst_92 = arith.constant dense<0.000000e+00> : vector<8x128xf32>
    %555 = tpu.matmul %554, %381, %cst_92 {dimension_numbers = #tpu.dot_dimension_numbers<[1], [0], [0], [1], [0, 0, 1, 1], [], []>} : vector<8x32xbf16>, vector<32x128xbf16>, vector<8x128xf32> -> vector<8x128xf32>
    %556 = arith.truncf %553 : vector<8x32xf32> to vector<8x32xbf16>
    %cst_93 = arith.constant dense<0.000000e+00> : vector<8x128xf32>
    %557 = tpu.matmul %556, %383, %cst_93 {dimension_numbers = #tpu.dot_dimension_numbers<[1], [0], [0], [1], [0, 0, 1, 1], [], []>} : vector<8x32xbf16>, vector<32x128xbf16>, vector<8x128xf32> -> vector<8x128xf32>
    %558 = arith.addf %555, %557 : vector<8x128xf32>
    %559 = vector.broadcast %385 : vector<1x128xf32> to vector<8x128xf32>
    %560 = arith.addf %558, %559 : vector<8x128xf32>
    %561 = arith.mulf %560, %8 : vector<8x128xf32>
    %562 = arith.negf %561 : vector<8x128xf32>
    %563 = math.exp %562 : vector<8x128xf32>
    %cst_94 = arith.constant 1.000000e+00 : f32
    %564 = vector.broadcast %cst_94 : f32 to vector<8x128xf32>
    %565 = arith.addf %564, %563 : vector<8x128xf32>
    %566 = arith.divf %564, %565 : vector<8x128xf32>
    %567 = arith.mulf %566, %8 : vector<8x128xf32>
    %568 = arith.addf %567, %11 : vector<8x128xf32>
    %569 = vector.extract_strided_slice %568 {offsets = [0, 0], sizes = [8, 32], strides = [1, 1]} : vector<8x128xf32> to vector<8x32xf32>
    %570 = vector.extract_strided_slice %568 {offsets = [0, 32], sizes = [8, 32], strides = [1, 1]} : vector<8x128xf32> to vector<8x32xf32>
    %571 = vector.extract_strided_slice %568 {offsets = [0, 64], sizes = [8, 32], strides = [1, 1]} : vector<8x128xf32> to vector<8x32xf32>
    %572 = vector.extract_strided_slice %568 {offsets = [0, 96], sizes = [8, 32], strides = [1, 1]} : vector<8x128xf32> to vector<8x32xf32>
    %573 = arith.mulf %570, %551 : vector<8x32xf32>
    %574 = arith.mulf %569, %571 : vector<8x32xf32>
    %575 = arith.addf %573, %574 : vector<8x32xf32>
    %576 = math.tanh %575 : vector<8x32xf32>
    %577 = arith.mulf %572, %576 : vector<8x32xf32>
    %c0_95 = arith.constant 0 : index
    %c0_96 = arith.constant 0 : index
    %578 = vector.load %arg5[%c0_95, %c0_96] : memref<32x1xf32, #tpu.memory_space<vmem>>, vector<32x1xf32>
    %cst_97 = arith.constant dense<0.000000e+00> : vector<8x1xf32>
    %579 = tpu.matmul %577, %578, %cst_97 {dimension_numbers = #tpu.dot_dimension_numbers<[1], [0], [0], [1], [0, 0, 1, 1], [], []>} : vector<8x32xf32>, vector<32x1xf32>, vector<8x1xf32> -> vector<8x1xf32>
    %c0_98 = arith.constant 0 : index
    %c0_99 = arith.constant 0 : index
    %580 = vector.load %arg6[%c0_98, %c0_99] : memref<1x1xf32, #tpu.memory_space<vmem>>, vector<1x1xf32>
    %581 = vector.broadcast %580 : vector<1x1xf32> to vector<8x1xf32>
    %582 = arith.addf %579, %581 : vector<8x1xf32>
    %c0_100 = arith.constant 0 : index
    %c0_101 = arith.constant 0 : index
    %583 = vector.load %arg7[%c0_100, %c0_101] : memref<8x1xf32, #tpu.memory_space<vmem>>, vector<8x1xf32>
    tpu.vector_store %arg7[%c0_100, %c0_101], %582 {strides = array<i32>} : memref<8x1xf32, #tpu.memory_space<vmem>>, vector<8x1xf32>,
    return
  }
}

</mosaic_0001>

<bundles_post_ra>
// kernel: lstm_model_forward.1
= control target key start
LH: loop header
LB: loop body
LE: loop exit
PB: predicated region body
PF: predicated region fallthrough
CT: control target
= control target key end

     0   :  { %v3347_v0 = vmov 0.0   ;;  %vm3348_vm0 = vmmov 0   ;;  %v3349_v3 = vmov 0   ;;  %v29_v4 = vlaneseq  ;;  %s3351_s29 = smov 64   ;;  %s3352_s30 = smov 32   ;;  %s4039_s1 = inlined_call_operand.vmem [shape: bf16[32,128], index: 1, kind: input, shape index: {}]   ;;  %s4040_s0 = inlined_call_operand.vmem [shape: f32[64,128], index: 0, kind: input, shape index: {}]   ;;  %s4041_s3 = inlined_call_operand.vmem [shape: bf16[2,32,128], index: 3, kind: input, shape index: {}]   ;;  %s4042_s2 = inlined_call_operand.vmem [shape: bf16[2,32,128], index: 2, kind: input, shape index: {}]   ;;  %s4043_s4 = inlined_call_operand.vmem [shape: f32[2,1,128], index: 4, kind: input, shape index: {}]   ;;  %s4044_s5 = inlined_call_operand.vmem [shape: f32[32,1], index: 5, kind: input, shape index: {}]   ;;  %s4045_s6 = inlined_call_operand.<no memory space> [shape: f32[1,1], index: 6, kind: input, shape index: {}]   ;;  %s4046_s7 = inlined_call_operand.vmem [shape: f32[8,1], index: 7, kind: output, shape index: {}]  }
   0x1   :  { %2855 = vmatprep.subr.bf16.mxu0 %v3347_v0  ;;  %v3397_v1 = vld [vmem:[%s4039_s1 + $0x8] sm:$0xff]   ;;  %2859 = vmatprep.mubr.msk.bf16.mxu0 %vm3348_vm0, %v3347_v0  ;;  %v3408_v2 = vld [vmem:[%s4039_s1] sm:$0xff]   ;;  %v3350_v8 = vmov 1.0   ;;  %vm53_vm4 = vcmask 261120   ;;  %v199_v56 = vld [vmem:[%s4040_s0 + $0x10] sm:$0xff]  ;;  %vm2640_vm5 = vcmask 7168  }
   0x2   :  { %2863 = vmatprep.subr.bf16.mxu1 %v3347_v0  ;;  %2867 = vmatprep.mubr.msk.bf16.mxu1 %vm3348_vm0, %v3347_v0  ;;  %v30_v5 = vand.u32 127, %v29_v4  ;;  %v40_v7 = vld [vmem:[%s4040_s0] sm:$0xff]  ;;  %v124_v33 = vld [vmem:[%s4040_s0 + $0x8] sm:$0xff] }
   0x3   :  { %2856 = vmatpush3.bf16.msra.mxu0 %v3397_v1  ;;  %2864 = vmatpush3.bf16.msra.mxu1 %v3397_v1 }
   0x4   :  { %2857 = vmatprep.subr.bf16.mxu0 %v3347_v0  ;;  %2865 = vmatprep.subr.bf16.mxu1 %v3347_v0  ;;  %vm31_vm1 = vcmp.ge.s32.totalorder %v30_v5, 64  ;;  %vm32_vm2 = vcmp.lt.s32.totalorder %v30_v5, 96 }
   0x5   :  { %vm3424_vm3 = vmand %vm31_vm1, %vm32_vm2 }
   0x6   :  { %v3433_v9 = vsel %vm3424_vm3, 2.0, %v3350_v8  ;;  %v3439_v20 = vsel %vm3424_vm3, -1.0, %v3347_v0 }
   0x7   :  { %2858 = vmatpush3.bf16.msra.mxu0 %v3408_v2  ;;  %2866 = vmatpush3.bf16.msra.mxu1 %v3408_v2 }
   0x8   :  { %2871 = vmatprep.subr.bf16.mxu0 %v3347_v0  ;;  %2879 = vmatprep.subr.bf16.mxu1 %v3347_v0 }
   0xa   :  { %2860 = vmatmul.mubr.bf16.vlgmr.msra.gmra.mxu0 %v3349_v3 }
   0xb   :  { %2872 = vmatpush3.bf16.msra.mxu0 %v3397_v1  ;;  %2875 = vmatprep.mubr.msk.bf16.mxu0 %vm3348_vm0, %v3347_v0 }
   0xc   :  { %2873 = vmatprep.subr.bf16.mxu0 %v3347_v0 }
   0xf   :  { %2874 = vmatpush3.bf16.msra.mxu0 %v3408_v2 }
  0x10   :  { %2887 = vmatprep.subr.bf16.mxu0 %v3347_v0 }
  0xca   :  { %v91_v10 = vpop.f32.mrf.mxu0 }
  0xcb   :  { %v97_v11 = vadd.f32 %v91_v10, %v40_v7 }
  0xcc   :  { %v2861_v12 = vpop.f32.mrf.mxu0 }
  0xcd   :  { %v98_v13 = vmul.f32 %v97_v11, %v3433_v9 }
  0xce   :  { %v94_v14 = vpop.f32.mrf.mxu0 }
  0xcf   :  { %v2648_v15 = vmul.f32 -1.442695, %v98_v13 }
  0xd0   :  { %v2862_v16 = vpop.f32.mrf.mxu0 }
  0xd1   :  { %3202 = vpow2.f32 %v2648_v15 }
  0xde   :  { %v3203_v17 = vpop.eup %3202 }
  0xdf   :  { %v102_v18 = vadd.f32 1.0, %v3203_v17 }
  0xe1   :  { %3204 = vrcp.f32 %v102_v18 }
  0xee   :  { %v3205_v19 = vpop.eup %3204 }
  0xef   :  { %v105_v21 = vmul.f32 %v3205_v19, %v3433_v9 }
  0xf1   :  { %v106_v22 = vadd.f32 %v105_v21, %v3439_v20  ;;  %v274_v21 = vld [vmem:[%s4040_s0 + $0x18] sm:$0xff] }
  0xf3   :  { %109 = vrot.lane.b32.xlu0 %v106_v22, %s3351_s29  ;;  %v107_v25 = vmul.f32 0.0, %v106_v22 }
 0x165   :  { %v110_v23 = vpop.permute.xlu0 %109 }
 0x166   :  { %v112_v24 = vmul.f32 %v110_v23, %v106_v22 }
 0x168   :  { %114 = vrot.lane.b32.xlu0 %v112_v24, %s3352_s30 }
 0x1da   :  { %v115_v26 = vpop.permute.xlu0 %114 }
 0x1db   :  { %v117_v27 = vadd.f32 %v115_v26, %v107_v25 }
 0x1dd   :  { %3206 = vtanh.f32 %v117_v27 }
 0x1ea   :  { %v3207_v28 = vpop.eup %3206 }
 0x1eb   :  { %120 = vrot.lane.b32.xlu1 %v3207_v28, %s3351_s29 }
 0x25d   :  { %v121_v29 = vpop.permute.xlu1 %120 }
 0x25e   :  { %v123_v30 = vmul.f32 %v121_v29, %v106_v22 }
 0x260   :  { %v125_v31 = vpack.c.bf16 %v123_v30, %v123_v30 }
 0x262   :  { %127 = vrot.lane.b32.xlu1 %v125_v31, %s3352_s30 }
 0x2d4   :  { %v3447_v32 = vpop.permute.xlu1 %127 }
 0x2d5   :  { %2868 = vmatmul.mubr.msk.bf16.vlgmr.msra.gmra.mxu1 %vm53_vm4, %v3447_v32 }
 0x2d6   :  { %2880 = vmatpush3.bf16.msra.mxu1 %v3397_v1  ;;  %2883 = vmatprep.mubr.msk.bf16.mxu1 %vm3348_vm0, %v3347_v0 }
 0x2d7   :  { %2881 = vmatprep.subr.bf16.mxu1 %v3347_v0 }
 0x2da   :  { %2882 = vmatpush3.bf16.msra.mxu1 %v3408_v2 }
 0x2db   :  { %2895 = vmatprep.subr.bf16.mxu1 %v3347_v0 }
 0x395   :  { %v166_v34 = vpop.f32.mrf.mxu1 }
 0x396   :  { %v172_v35 = vadd.f32 %v166_v34, %v124_v33 }
 0x397   :  { %v2869_v36 = vpop.f32.mrf.mxu1 }
 0x398   :  { %v173_v37 = vmul.f32 %v172_v35, %v3433_v9 }
 0x399   :  { %v169_v38 = vpop.f32.mrf.mxu1 }
 0x39a   :  { %v2650_v39 = vmul.f32 -1.442695, %v173_v37 }
 0x39b   :  { %v2870_v40 = vpop.f32.mrf.mxu1 }
 0x39c   :  { %3208 = vpow2.f32 %v2650_v39 }
 0x3a9   :  { %v3209_v41 = vpop.eup %3208 }
 0x3aa   :  { %v177_v42 = vadd.f32 1.0, %v3209_v41 }
 0x3ac   :  { %3210 = vrcp.f32 %v177_v42 }
 0x3b9   :  { %v3211_v43 = vpop.eup %3210 }
 0x3ba   :  { %v180_v44 = vmul.f32 %v3211_v43, %v3433_v9 }
 0x3bc   :  { %v181_v45 = vadd.f32 %v180_v44, %v3439_v20 }
 0x3be   :  { %184 = vrot.lane.b32.xlu0 %v181_v45, %s3351_s29  ;;  %v182_v48 = vmul.f32 %v181_v45, %v117_v27 }
 0x430   :  { %v185_v46 = vpop.permute.xlu0 %184 }
 0x431   :  { %v187_v47 = vmul.f32 %v185_v46, %v181_v45 }
 0x433   :  { %189 = vrot.lane.b32.xlu1 %v187_v47, %s3352_s30 }
 0x4a5   :  { %v190_v49 = vpop.permute.xlu1 %189 }
 0x4a6   :  { %v192_v50 = vadd.f32 %v190_v49, %v182_v48 }
 0x4a8   :  { %3212 = vtanh.f32 %v192_v50 }
 0x4b5   :  { %v3213_v51 = vpop.eup %3212 }
 0x4b6   :  { %195 = vrot.lane.b32.xlu0 %v3213_v51, %s3351_s29 }
 0x528   :  { %v196_v52 = vpop.permute.xlu0 %195 }
 0x529   :  { %v198_v53 = vmul.f32 %v196_v52, %v181_v45  ;;  %v349_v45 = vld [vmem:[%s4040_s0 + $0x20] sm:$0xff] }
 0x52b   :  { %v200_v54 = vpack.c.bf16 %v198_v53, %v198_v53 }
 0x52d   :  { %202 = vrot.lane.b32.xlu1 %v200_v54, %s3352_s30 }
 0x59f   :  { %v3467_v55 = vpop.permute.xlu1 %202 }
 0x5a0   :  { %2876 = vmatmul.mubr.msk.bf16.vlgmr.msra.gmra.mxu0 %vm53_vm4, %v3467_v55 }
 0x5a1   :  { %2888 = vmatpush3.bf16.msra.mxu0 %v3397_v1  ;;  %2891 = vmatprep.mubr.msk.bf16.mxu0 %vm3348_vm0, %v3347_v0 }
 0x5a2   :  { %2889 = vmatprep.subr.bf16.mxu0 %v3347_v0 }
 0x5a5   :  { %2890 = vmatpush3.bf16.msra.mxu0 %v3408_v2 }
 0x5a6   :  { %2903 = vmatprep.subr.bf16.mxu0 %v3347_v0 }
 0x660   :  { %v241_v57 = vpop.f32.mrf.mxu0 }
 0x661   :  { %v247_v58 = vadd.f32 %v241_v57, %v199_v56 }
 0x662   :  { %v2877_v59 = vpop.f32.mrf.mxu0 }
 0x663   :  { %v248_v60 = vmul.f32 %v247_v58, %v3433_v9 }
 0x664   :  { %v244_v61 = vpop.f32.mrf.mxu0 }
 0x665   :  { %v2652_v62 = vmul.f32 -1.442695, %v248_v60 }
 0x666   :  { %v2878_v63 = vpop.f32.mrf.mxu0 }
 0x667   :  { %3214 = vpow2.f32 %v2652_v62 }
 0x674   :  { %v3215_v4 = vpop.eup %3214 }
 0x675   :  { %v252_v5 = vadd.f32 1.0, %v3215_v4 }
 0x677   :  { %3216 = vrcp.f32 %v252_v5 }
 0x684   :  { %v3217_v6 = vpop.eup %3216 }
 0x685   :  { %v255_v7 = vmul.f32 %v3217_v6, %v3433_v9 }
 0x687   :  { %v256_v8 = vadd.f32 %v255_v7, %v3439_v20 }
 0x689   :  { %259 = vrot.lane.b32.xlu0 %v256_v8, %s3351_s29  ;;  %v257_v12 = vmul.f32 %v256_v8, %v192_v50 }
 0x6fb   :  { %v260_v10 = vpop.permute.xlu0 %259 }
 0x6fc   :  { %v262_v11 = vmul.f32 %v260_v10, %v256_v8  ;;  %v424_v10 = vld [vmem:[%s4040_s0 + $0x28] sm:$0xff] }
 0x6fe   :  { %264 = vrot.lane.b32.xlu1 %v262_v11, %s3352_s30 }
 0x770   :  { %v265_v13 = vpop.permute.xlu1 %264 }
 0x771   :  { %v267_v14 = vadd.f32 %v265_v13, %v257_v12 }
 0x773   :  { %3218 = vtanh.f32 %v267_v14 }
 0x780   :  { %v3219_v15 = vpop.eup %3218 }
 0x781   :  { %270 = vrot.lane.b32.xlu0 %v3219_v15, %s3351_s29 }
 0x7f3   :  { %v271_v16 = vpop.permute.xlu0 %270 }
 0x7f4   :  { %v273_v17 = vmul.f32 %v271_v16, %v256_v8 }
 0x7f6   :  { %v275_v18 = vpack.c.bf16 %v273_v17, %v273_v17 }
 0x7f8   :  { %277 = vrot.lane.b32.xlu1 %v275_v18, %s3352_s30 }
 0x86a   :  { %v3487_v19 = vpop.permute.xlu1 %277 }
 0x86b   :  { %2884 = vmatmul.mubr.msk.bf16.vlgmr.msra.gmra.mxu1 %vm53_vm4, %v3487_v19 }
 0x86c   :  { %2896 = vmatpush3.bf16.msra.mxu1 %v3397_v1  ;;  %2899 = vmatprep.mubr.msk.bf16.mxu1 %vm3348_vm0, %v3347_v0 }
 0x86d   :  { %2897 = vmatprep.subr.bf16.mxu1 %v3347_v0 }
 0x870   :  { %2898 = vmatpush3.bf16.msra.mxu1 %v3408_v2 }
 0x871   :  { %2911 = vmatprep.subr.bf16.mxu1 %v3347_v0 }
 0x92b   :  { %v316_v22 = vpop.f32.mrf.mxu1 }
 0x92c   :  { %v322_v23 = vadd.f32 %v316_v22, %v274_v21 }
 0x92d   :  { %v2885_v24 = vpop.f32.mrf.mxu1 }
 0x92e   :  { %v323_v25 = vmul.f32 %v322_v23, %v3433_v9 }
 0x92f   :  { %v319_v26 = vpop.f32.mrf.mxu1 }
 0x930   :  { %v2654_v27 = vmul.f32 -1.442695, %v323_v25 }
 0x931   :  { %v2886_v28 = vpop.f32.mrf.mxu1 }
 0x932   :  { %3220 = vpow2.f32 %v2654_v27 }
 0x93f   :  { %v3221_v29 = vpop.eup %3220 }
 0x940   :  { %v327_v30 = vadd.f32 1.0, %v3221_v29 }
 0x942   :  { %3222 = vrcp.f32 %v327_v30 }
 0x94f   :  { %v3223_v31 = vpop.eup %3222 }
 0x950   :  { %v330_v33 = vmul.f32 %v3223_v31, %v3433_v9 }
 0x952   :  { %v331_v34 = vadd.f32 %v330_v33, %v3439_v20 }
 0x954   :  { %334 = vrot.lane.b32.xlu0 %v331_v34, %s3351_s29  ;;  %v332_v37 = vmul.f32 %v331_v34, %v267_v14 }
 0x9c6   :  { %v335_v35 = vpop.permute.xlu0 %334 }
 0x9c7   :  { %v337_v36 = vmul.f32 %v335_v35, %v331_v34 }
 0x9c9   :  { %339 = vrot.lane.b32.xlu1 %v337_v36, %s3352_s30 }
 0xa3b   :  { %v340_v38 = vpop.permute.xlu1 %339 }
 0xa3c   :  { %v342_v39 = vadd.f32 %v340_v38, %v332_v37 }
 0xa3e   :  { %3224 = vtanh.f32 %v342_v39 }
 0xa4b   :  { %v3225_v40 = vpop.eup %3224 }
 0xa4c   :  { %345 = vrot.lane.b32.xlu0 %v3225_v40, %s3351_s29 }
 0xabe   :  { %v346_v41 = vpop.permute.xlu0 %345 }
 0xabf   :  { %v348_v42 = vmul.f32 %v346_v41, %v331_v34  ;;  %v499_v34 = vld [vmem:[%s4040_s0 + $0x30] sm:$0xff] }
 0xac1   :  { %v350_v43 = vpack.c.bf16 %v348_v42, %v348_v42 }
 0xac3   :  { %352 = vrot.lane.b32.xlu1 %v350_v43, %s3352_s30 }
 0xb35   :  { %v3507_v44 = vpop.permute.xlu1 %352 }
 0xb36   :  { %2892 = vmatmul.mubr.msk.bf16.vlgmr.msra.gmra.mxu0 %vm53_vm4, %v3507_v44 }
 0xb37   :  { %2904 = vmatpush3.bf16.msra.mxu0 %v3397_v1  ;;  %2907 = vmatprep.mubr.msk.bf16.mxu0 %vm3348_vm0, %v3347_v0 }
 0xb38   :  { %2905 = vmatprep.subr.bf16.mxu0 %v3347_v0 }
 0xb3b   :  { %2906 = vmatpush3.bf16.msra.mxu0 %v3408_v2 }
 0xb3c   :  { %2919 = vmatprep.subr.bf16.mxu0 %v3347_v0 }
 0xbf6   :  { %v391_v46 = vpop.f32.mrf.mxu0 }
 0xbf7   :  { %v397_v47 = vadd.f32 %v391_v46, %v349_v45 }
 0xbf8   :  { %v2893_v48 = vpop.f32.mrf.mxu0 }
 0xbf9   :  { %v398_v49 = vmul.f32 %v397_v47, %v3433_v9 }
 0xbfa   :  { %v394_v50 = vpop.f32.mrf.mxu0 }
 0xbfb   :  { %v2656_v51 = vmul.f32 -1.442695, %v398_v49 }
 0xbfc   :  { %v2894_v52 = vpop.f32.mrf.mxu0 }
 0xbfd   :  { %3226 = vpow2.f32 %v2656_v51 }
 0xc0a   :  { %v3227_v53 = vpop.eup %3226 }
 0xc0b   :  { %v402_v54 = vadd.f32 1.0, %v3227_v53  ;;  %v3567_v53 = vld [vmem:[%s4041_s3 + $0x8] sm:$0xff]  }
 0xc0d   :  { %3228 = vrcp.f32 %v402_v54  ;;  %v3572_v54 = vld [vmem:[%s4041_s3] sm:$0xff]  }
 0xc1a   :  { %v3229_v56 = vpop.eup %3228 }
 0xc1b   :  { %v405_v57 = vmul.f32 %v3229_v56, %v3433_v9 }
 0xc1d   :  { %v406_v58 = vadd.f32 %v405_v57, %v3439_v20 }
 0xc1f   :  { %409 = vrot.lane.b32.xlu0 %v406_v58, %s3351_s29  ;;  %v407_v61 = vmul.f32 %v406_v58, %v342_v39 }
 0xc91   :  { %v410_v59 = vpop.permute.xlu0 %409 }
 0xc92   :  { %v412_v60 = vmul.f32 %v410_v59, %v406_v58 }
 0xc94   :  { %414 = vrot.lane.b32.xlu1 %v412_v60, %s3352_s30  ;;  %v3196_v60 = vld [vmem:[%s4042_s2 + $0x8] sm:$0xff]  }
 0xd06   :  { %v415_v62 = vpop.permute.xlu1 %414 }
 0xd07   :  { %v417_v63 = vadd.f32 %v415_v62, %v407_v61  ;;  %v3197_v62 = vld [vmem:[%s4042_s2] sm:$0xff]  }
 0xd09   :  { %3230 = vtanh.f32 %v417_v63 }
 0xd16   :  { %v3231_v4 = vpop.eup %3230 }
 0xd17   :  { %420 = vrot.lane.b32.xlu0 %v3231_v4, %s3351_s29 }
 0xd89   :  { %v421_v5 = vpop.permute.xlu0 %420 }
 0xd8a   :  { %v423_v6 = vmul.f32 %v421_v5, %v406_v58 }
 0xd8c   :  { %v425_v7 = vpack.c.bf16 %v423_v6, %v423_v6 }
 0xd8e   :  { %427 = vrot.lane.b32.xlu1 %v425_v7, %s3352_s30  ;;  %v3644_v7 = vld [vmem:[%s4043_s4] ss:$0 sm:$0xff] }
 0xe00   :  { %v3527_v8 = vpop.permute.xlu1 %427 }
 0xe01   :  { %2900 = vmatmul.mubr.msk.bf16.vlgmr.msra.gmra.mxu1 %vm53_vm4, %v3527_v8 }
 0xe02   :  { %2912 = vmatpush3.bf16.msra.mxu1 %v3397_v1  ;;  %2915 = vmatprep.mubr.msk.bf16.mxu1 %vm3348_vm0, %v3347_v0 }
 0xe03   :  { %2913 = vmatprep.subr.bf16.mxu1 %v3347_v0 }
 0xe06   :  { %2914 = vmatpush3.bf16.msra.mxu1 %v3408_v2 }
 0xe07   :  { %2927 = vmatprep.subr.bf16.mxu1 %v3347_v0 }
 0xec1   :  { %v466_v11 = vpop.f32.mrf.mxu1 }
 0xec2   :  { %v472_v12 = vadd.f32 %v466_v11, %v424_v10 }
 0xec3   :  { %v2901_v13 = vpop.f32.mrf.mxu1 }
 0xec4   :  { %v473_v14 = vmul.f32 %v472_v12, %v3433_v9 }
 0xec5   :  { %v469_v15 = vpop.f32.mrf.mxu1 }
 0xec6   :  { %v2658_v1 = vmul.f32 -1.442695, %v473_v14 }
 0xec7   :  { %v2902_v16 = vpop.f32.mrf.mxu1 }
 0xec8   :  { %3232 = vpow2.f32 %v2658_v1 }
 0xed5   :  { %v3233_v17 = vpop.eup %3232 }
 0xed6   :  { %v477_v18 = vadd.f32 1.0, %v3233_v17 }
 0xed8   :  { %3234 = vrcp.f32 %v477_v18 }
 0xee5   :  { %v3235_v21 = vpop.eup %3234 }
 0xee6   :  { %v480_v2 = vmul.f32 %v3235_v21, %v3433_v9 }
 0xee8   :  { %v481_v22 = vadd.f32 %v480_v2, %v3439_v20 }
 0xeea   :  { %484 = vrot.lane.b32.xlu0 %v481_v22, %s3351_s29  ;;  %v482_v25 = vmul.f32 %v481_v22, %v417_v63 }
 0xf5c   :  { %v485_v23 = vpop.permute.xlu0 %484 }
 0xf5d   :  { %v487_v24 = vmul.f32 %v485_v23, %v481_v22 }
 0xf5f   :  { %489 = vrot.lane.b32.xlu1 %v487_v24, %s3352_s30 }
 0xfd1   :  { %v490_v26 = vpop.permute.xlu1 %489 }
 0xfd2   :  { %v492_v27 = vadd.f32 %v490_v26, %v482_v25 }
 0xfd4   :  { %3236 = vtanh.f32 %v492_v27 }
 0xfe1   :  { %v3237_v28 = vpop.eup %3236 }
 0xfe2   :  { %495 = vrot.lane.b32.xlu0 %v3237_v28, %s3351_s29 }
0x1054   :  { %v496_v29 = vpop.permute.xlu0 %495 }
0x1055   :  { %v498_v30 = vmul.f32 %v496_v29, %v481_v22 }
0x1057   :  { %v500_v31 = vpack.c.bf16 %v498_v30, %v498_v30 }
0x1059   :  { %502 = vrot.lane.b32.xlu1 %v500_v31, %s3352_s30 }
0x10cb   :  { %v3547_v33 = vpop.permute.xlu1 %502 }
0x10cc   :  { %2908 = vmatmul.mubr.msk.bf16.vlgmr.msra.gmra.mxu0 %vm53_vm4, %v3547_v33 }
0x10cd   :  { %2923 = vmatprep.mubr.msk.bf16.mxu0 %vm3348_vm0, %v3347_v0  ;;  %2920 = vmatpush3.bf16.msra.mxu0 %v3567_v53 }
0x10ce   :  { %2921 = vmatprep.subr.bf16.mxu0 %v3347_v0 }
0x10d1   :  { %2922 = vmatpush3.bf16.msra.mxu0 %v3572_v54 }
0x10d2   :  { %2935 = vmatprep.subr.bf16.mxu0 %v3347_v0 }
0x10d4   :  { %2924 = vmatmul.mubr.bf16.vlgmr.msra.gmra.mxu0 %v3349_v3 }
0x10d5   :  { %2936 = vmatpush3.bf16.msra.mxu0 %v3567_v53  ;;  %2939 = vmatprep.mubr.msk.bf16.mxu0 %vm3348_vm0, %v3347_v0 }
0x10d6   :  { %2937 = vmatprep.subr.bf16.mxu0 %v3347_v0 }
0x10d9   :  { %2938 = vmatpush3.bf16.msra.mxu0 %v3572_v54 }
0x10da   :  { %2951 = vmatprep.subr.bf16.mxu0 %v3347_v0 }
0x118c   :  { %v541_v35 = vpop.f32.mrf.mxu0 }
0x118d   :  { %v547_v36 = vadd.f32 %v541_v35, %v499_v34 }
0x118e   :  { %v2909_v37 = vpop.f32.mrf.mxu0 }
0x118f   :  { %v548_v38 = vmul.f32 %v547_v36, %v3433_v9 }
0x1190   :  { %v544_v39 = vpop.f32.mrf.mxu0 }
0x1191   :  { %v2660_v40 = vmul.f32 -1.442695, %v548_v38 }
0x1192   :  { %v2910_v41 = vpop.f32.mrf.mxu0 }
0x1193   :  { %3238 = vpow2.f32 %v2660_v40 }
0x11a0   :  { %v3239_v42 = vpop.eup %3238 }
0x11a1   :  { %v552_v43 = vadd.f32 1.0, %v3239_v42 }
0x11a3   :  { %3240 = vrcp.f32 %v552_v43 }
0x11b0   :  { %v3241_v45 = vpop.eup %3240 }
0x11b1   :  { %v555_v46 = vmul.f32 %v3241_v45, %v3433_v9 }
0x11b3   :  { %v556_v47 = vadd.f32 %v555_v46, %v3439_v20 }
0x11b5   :  { %559 = vrot.lane.b32.xlu0 %v556_v47, %s3351_s29  ;;  %v557_v50 = vmul.f32 %v556_v47, %v492_v27 }
0x1227   :  { %v560_v48 = vpop.permute.xlu0 %559 }
0x1228   :  { %v562_v49 = vmul.f32 %v560_v48, %v556_v47 }
0x122a   :  { %564 = vrot.lane.b32.xlu1 %v562_v49, %s3352_s30 }
0x129c   :  { %v565_v51 = vpop.permute.xlu1 %564 }
0x129d   :  { %v3561_v52 = vadd.f32 %v565_v51, %v557_v50 }
0x129f   :  { %3242 = vtanh.f32 %v3561_v52 }
0x12ac   :  { %v3243_v56 = vpop.eup %3242 }
0x12ad   :  { %570 = vrot.lane.b32.xlu0 %v3243_v56, %s3351_s29 }
0x131f   :  { %v571_v57 = vpop.permute.xlu0 %570 }
0x1320   :  { %v573_v58 = vmul.f32 %v571_v57, %v556_v47 }
0x1322   :  { %v575_v59 = vpack.c.bf16 %v573_v58, %v573_v58 }
0x1324   :  { %577 = vrot.lane.b32.xlu1 %v575_v59, %s3352_s30 }
0x1396   :  { %v578_v61 = vpop.permute.xlu1 %577 }
0x1397   :  { %2916 = vmatmul.mubr.msk.bf16.vlgmr.msra.gmra.mxu1 %vm53_vm4, %v578_v61 }
0x1398   :  { %2928 = vmatpush3.bf16.msra.mxu1 %v3196_v60  ;;  %2931 = vmatprep.mubr.msk.bf16.mxu1 %vm3348_vm0, %v3347_v0 }
0x1399   :  { %2929 = vmatprep.subr.bf16.mxu1 %v3347_v0 }
0x139c   :  { %2930 = vmatpush3.bf16.msra.mxu1 %v3197_v62 }
0x139d   :  { %2943 = vmatprep.subr.bf16.mxu1 %v3347_v0 }
0x139f   :  { %2932 = vmatmul.mubr.msk.bf16.vlgmr.msra.gmra.mxu1 %vm53_vm4, %v3447_v32  ;;  %v704_v32 = vpop.f32.mrf.mxu0 }
0x13a0   :  { %2944 = vmatpush3.bf16.msra.mxu1 %v3196_v60  ;;  %2947 = vmatprep.mubr.msk.bf16.mxu1 %vm3348_vm0, %v3347_v0 }
0x13a1   :  { %2945 = vmatprep.subr.bf16.mxu1 %v3347_v0 }
0x13a4   :  { %2946 = vmatpush3.bf16.msra.mxu1 %v3197_v62 }
0x13a5   :  { %2959 = vmatprep.subr.bf16.mxu1 %v3347_v0 }
0x13a7   :  { %2948 = vmatmul.mubr.msk.bf16.vlgmr.msra.gmra.mxu1 %vm53_vm4, %v3467_v55  ;;  %v2925_v55 = vpop.f32.mrf.mxu0 }
0x13a8   :  { %2960 = vmatpush3.bf16.msra.mxu1 %v3196_v60  ;;  %2963 = vmatprep.mubr.msk.bf16.mxu1 %vm3348_vm0, %v3347_v0 }
0x13a9   :  { %2961 = vmatprep.subr.bf16.mxu1 %v3347_v0 }
0x13ac   :  { %2962 = vmatpush3.bf16.msra.mxu1 %v3197_v62 }
0x13ad   :  { %2975 = vmatprep.subr.bf16.mxu1 %v3347_v0 }
0x13af   :  { %2964 = vmatmul.mubr.msk.bf16.vlgmr.msra.gmra.mxu1 %vm53_vm4, %v3487_v19  ;;  %v707_v19 = vpop.f32.mrf.mxu0 }
0x13b0   :  { %2976 = vmatpush3.bf16.msra.mxu1 %v3196_v60  ;;  %2979 = vmatprep.mubr.msk.bf16.mxu1 %vm3348_vm0, %v3347_v0 }
0x13b1   :  { %2977 = vmatprep.subr.bf16.mxu1 %v3347_v0 }
0x13b4   :  { %2978 = vmatpush3.bf16.msra.mxu1 %v3197_v62 }
0x13b5   :  { %2991 = vmatprep.subr.bf16.mxu1 %v3347_v0 }
0x13b7   :  { %2980 = vmatmul.mubr.msk.bf16.vlgmr.msra.gmra.mxu1 %vm53_vm4, %v3507_v44  ;;  %v2926_v44 = vpop.f32.mrf.mxu0 }
0x13b8   :  { %2992 = vmatpush3.bf16.msra.mxu1 %v3196_v60  ;;  %2995 = vmatprep.mubr.msk.bf16.mxu1 %vm3348_vm0, %v3347_v0 }
0x13b9   :  { %2993 = vmatprep.subr.bf16.mxu1 %v3347_v0 }
0x13bc   :  { %2994 = vmatpush3.bf16.msra.mxu1 %v3197_v62 }
0x13bd   :  { %3007 = vmatprep.subr.bf16.mxu1 %v3347_v0 }
0x13bf   :  { %2996 = vmatmul.mubr.msk.bf16.vlgmr.msra.gmra.mxu1 %vm53_vm4, %v3527_v8 }
0x13c0   :  { %3008 = vmatpush3.bf16.msra.mxu1 %v3196_v60  ;;  %3011 = vmatprep.mubr.msk.bf16.mxu1 %vm3348_vm0, %v3347_v0 }
0x13c1   :  { %3009 = vmatprep.subr.bf16.mxu1 %v3347_v0 }
0x13c4   :  { %3010 = vmatpush3.bf16.msra.mxu1 %v3197_v62 }
0x13c5   :  { %3023 = vmatprep.subr.bf16.mxu1 %v3347_v0 }
0x13c7   :  { %3012 = vmatmul.mubr.msk.bf16.vlgmr.msra.gmra.mxu1 %vm53_vm4, %v3547_v33 }
0x13c8   :  { %3024 = vmatpush3.bf16.msra.mxu1 %v3196_v60  ;;  %3027 = vmatprep.mubr.msk.bf16.mxu1 %vm3348_vm0, %v3347_v0 }
0x13c9   :  { %3025 = vmatprep.subr.bf16.mxu1 %v3347_v0 }
0x13cc   :  { %3026 = vmatpush3.bf16.msra.mxu1 %v3197_v62 }
0x13cd   :  { %3039 = vmatprep.subr.bf16.mxu1 %v3347_v0 }
0x13cf   :  { %3028 = vmatmul.mubr.msk.bf16.vlgmr.msra.gmra.mxu1 %vm53_vm4, %v578_v61 }
0x13d0   :  { %3040 = vmatpush3.bf16.msra.mxu1 %v3196_v60  ;;  %3043 = vmatprep.mubr.msk.bf16.mxu1 %vm3348_vm0, %v3347_v0 }
0x13d1   :  { %3041 = vmatprep.subr.bf16.mxu1 %v3347_v0 }
0x13d4   :  { %3042 = vmatpush3.bf16.msra.mxu1 %v3197_v62 }
0x13d5   :  { %3055 = vmatprep.subr.bf16.mxu1 %v3347_v0 }
0x1457   :  { %v3639_v63 = vpop.f32.mrf.mxu1 }
0x1459   :  { %v2917_v4 = vpop.f32.mrf.mxu1 }
0x145b   :  { %v619_v5 = vpop.f32.mrf.mxu1 }
0x145d   :  { %v2918_v6 = vpop.f32.mrf.mxu1 }
0x145f   :  { %v756_v8 = vpop.f32.mrf.mxu1 }
0x1460   :  { %v757_v10 = vadd.f32 %v756_v8, %v704_v32 }
0x1461   :  { %v2933_v11 = vpop.f32.mrf.mxu1 }
0x1462   :  { %v768_v12 = vadd.f32 %v3644_v7, %v757_v10 }
0x1463   :  { %v759_v13 = vpop.f32.mrf.mxu1 }
0x1464   :  { %v769_v14 = vmul.f32 %v768_v12, %v3433_v9 }
0x1465   :  { %v2934_v15 = vpop.f32.mrf.mxu1 }
0x1466   :  { %v2669_v1 = vmul.f32 -1.442695, %v769_v14 }
0x1467   :  { %v876_v16 = vpop.f32.mrf.mxu1 }
0x1468   :  { %3244 = vpow2.f32 %v2669_v1 }
0x1469   :  { %v2949_v17 = vpop.f32.mrf.mxu1 }
0x146b   :  { %v879_v18 = vpop.f32.mrf.mxu1 }
0x146d   :  { %v2950_v21 = vpop.f32.mrf.mxu1 }
0x146f   :  { %v3648_v2 = vpop.f32.mrf.mxu1 }
0x1471   :  { %v2965_v22 = vpop.f32.mrf.mxu1 }
0x1473   :  { %v993_v23 = vpop.f32.mrf.mxu1 }
0x1475   :  { %v3245_v24 = vpop.eup %3244  ;;  %v2966_v25 = vpop.f32.mrf.mxu1 }
0x1476   :  { %v773_v26 = vadd.f32 1.0, %v3245_v24 }
0x1477   :  { %v3650_v27 = vpop.f32.mrf.mxu1 }
0x1478   :  { %3246 = vrcp.f32 %v773_v26 }
0x1479   :  { %v2981_v28 = vpop.f32.mrf.mxu1 }
0x147b   :  { %v1107_v29 = vpop.f32.mrf.mxu1 }
0x147d   :  { %v2982_v30 = vpop.f32.mrf.mxu1 }
0x147f   :  { %v3652_v31 = vpop.f32.mrf.mxu1 }
0x1481   :  { %v2997_v33 = vpop.f32.mrf.mxu1 }
0x1483   :  { %v1221_v34 = vpop.f32.mrf.mxu1 }
0x1485   :  { %v3247_v35 = vpop.eup %3246  ;;  %v2998_v36 = vpop.f32.mrf.mxu1 }
0x1486   :  { %v776_v37 = vmul.f32 %v3247_v35, %v3433_v9 }
0x1487   :  { %v3655_v38 = vpop.f32.mrf.mxu1 }
0x1488   :  { %v777_v39 = vadd.f32 %v776_v37, %v3439_v20 }
0x1489   :  { %v3013_v40 = vpop.f32.mrf.mxu1 }
0x148a   :  { %780 = vrot.lane.b32.xlu0 %v777_v39, %s3351_s29  ;;  %v778_v50 = vmul.f32 0.0, %v777_v39 }
0x148b   :  { %v1335_v41 = vpop.f32.mrf.mxu1 }
0x148d   :  { %v3014_v42 = vpop.f32.mrf.mxu1 }
0x148f   :  { %v3659_v43 = vpop.f32.mrf.mxu1 }
0x1491   :  { %v3029_v45 = vpop.f32.mrf.mxu1 }
0x1493   :  { %v1449_v46 = vpop.f32.mrf.mxu1 }
0x1495   :  { %v3030_v47 = vpop.f32.mrf.mxu1 }
0x14fc   :  { %v781_v48 = vpop.permute.xlu0 %780 }
0x14fd   :  { %v783_v49 = vmul.f32 %v781_v48, %v777_v39 }
0x14ff   :  { %785 = vrot.lane.b32.xlu1 %v783_v49, %s3352_s30 }
0x1571   :  { %v786_v51 = vpop.permute.xlu1 %785 }
0x1572   :  { %v788_v56 = vadd.f32 %v786_v51, %v778_v50 }
0x1574   :  { %3248 = vtanh.f32 %v788_v56 }
0x1581   :  { %v3249_v57 = vpop.eup %3248 }
0x1582   :  { %791 = vrot.lane.b32.xlu0 %v3249_v57, %s3351_s29 }
0x15f4   :  { %v792_v58 = vpop.permute.xlu0 %791 }
0x15f5   :  { %v794_v59 = vmul.f32 %v792_v58, %v777_v39 }
0x15f7   :  { %v795_v60 = vpack.c.bf16 %v794_v59, %v794_v59 }
0x15f9   :  { %797 = vrot.lane.b32.xlu1 %v795_v60, %s3352_s30 }
0x166b   :  { %v3664_v61 = vpop.permute.xlu1 %797 }
0x166c   :  { %2940 = vmatmul.mubr.msk.bf16.vlgmr.msra.gmra.mxu0 %vm53_vm4, %v3664_v61 }
0x166d   :  { %2952 = vmatpush3.bf16.msra.mxu0 %v3567_v53  ;;  %2955 = vmatprep.mubr.msk.bf16.mxu0 %vm3348_vm0, %v3347_v0 }
0x166e   :  { %2953 = vmatprep.subr.bf16.mxu0 %v3347_v0 }
0x1671   :  { %2954 = vmatpush3.bf16.msra.mxu0 %v3572_v54 }
0x1672   :  { %2967 = vmatprep.subr.bf16.mxu0 %v3347_v0 }
0x172c   :  { %v836_v62 = vpop.f32.mrf.mxu0 }
0x172d   :  { %v877_v32 = vadd.f32 %v876_v16, %v836_v62 }
0x172e   :  { %v2941_v55 = vpop.f32.mrf.mxu0 }
0x172f   :  { %v882_v19 = vadd.f32 %v3644_v7, %v877_v32 }
0x1730   :  { %v839_v44 = vpop.f32.mrf.mxu0 }
0x1731   :  { %v883_v4 = vmul.f32 %v882_v19, %v3433_v9 }
0x1732   :  { %v2942_v5 = vpop.f32.mrf.mxu0 }
0x1733   :  { %v2672_v6 = vmul.f32 -1.442695, %v883_v4 }
0x1735   :  { %3250 = vpow2.f32 %v2672_v6 }
0x1742   :  { %v3251_v8 = vpop.eup %3250 }
0x1743   :  { %v887_v10 = vadd.f32 1.0, %v3251_v8 }
0x1745   :  { %3252 = vrcp.f32 %v887_v10 }
0x1752   :  { %v3253_v11 = vpop.eup %3252 }
0x1753   :  { %v890_v12 = vmul.f32 %v3253_v11, %v3433_v9 }
0x1755   :  { %v891_v13 = vadd.f32 %v890_v12, %v3439_v20 }
0x1757   :  { %894 = vrot.lane.b32.xlu0 %v891_v13, %s3351_s29  ;;  %v892_v1 = vmul.f32 %v891_v13, %v788_v56 }
0x17c9   :  { %v895_v14 = vpop.permute.xlu0 %894 }
0x17ca   :  { %v897_v15 = vmul.f32 %v895_v14, %v891_v13 }
0x17cc   :  { %899 = vrot.lane.b32.xlu1 %v897_v15, %s3352_s30 }
0x183e   :  { %v900_v16 = vpop.permute.xlu1 %899 }
0x183f   :  { %v902_v17 = vadd.f32 %v900_v16, %v892_v1 }
0x1841   :  { %3254 = vtanh.f32 %v902_v17 }
0x184e   :  { %v3255_v18 = vpop.eup %3254 }
0x184f   :  { %905 = vrot.lane.b32.xlu0 %v3255_v18, %s3351_s29 }
0x18c1   :  { %v906_v21 = vpop.permute.xlu0 %905 }
0x18c2   :  { %v908_v22 = vmul.f32 %v906_v21, %v891_v13 }
0x18c4   :  { %v909_v23 = vpack.c.bf16 %v908_v22, %v908_v22 }
0x18c6   :  { %911 = vrot.lane.b32.xlu1 %v909_v23, %s3352_s30 }
0x1938   :  { %v3682_v24 = vpop.permute.xlu1 %911 }
0x1939   :  { %2956 = vmatmul.mubr.msk.bf16.vlgmr.msra.gmra.mxu0 %vm53_vm4, %v3682_v24 }
0x193a   :  { %2968 = vmatpush3.bf16.msra.mxu0 %v3567_v53  ;;  %2971 = vmatprep.mubr.msk.bf16.mxu0 %vm3348_vm0, %v3347_v0 }
0x193b   :  { %2969 = vmatprep.subr.bf16.mxu0 %v3347_v0 }
0x193e   :  { %2970 = vmatpush3.bf16.msra.mxu0 %v3572_v54 }
0x193f   :  { %2983 = vmatprep.subr.bf16.mxu0 %v3347_v0 }
0x19f9   :  { %v950_v25 = vpop.f32.mrf.mxu0 }
0x19fa   :  { %v991_v26 = vadd.f32 %v3648_v2, %v950_v25 }
0x19fb   :  { %v2957_v28 = vpop.f32.mrf.mxu0 }
0x19fc   :  { %v996_v29 = vadd.f32 %v3644_v7, %v991_v26 }
0x19fd   :  { %v953_v30 = vpop.f32.mrf.mxu0 }
0x19fe   :  { %v997_v33 = vmul.f32 %v996_v29, %v3433_v9 }
0x19ff   :  { %v2958_v34 = vpop.f32.mrf.mxu0 }
0x1a00   :  { %v2675_v35 = vmul.f32 -1.442695, %v997_v33 }
0x1a02   :  { %3256 = vpow2.f32 %v2675_v35 }
0x1a0f   :  { %v3257_v36 = vpop.eup %3256 }
0x1a10   :  { %v1001_v37 = vadd.f32 1.0, %v3257_v36 }
0x1a12   :  { %3258 = vrcp.f32 %v1001_v37 }
0x1a1f   :  { %v3259_v39 = vpop.eup %3258 }
0x1a20   :  { %v1004_v40 = vmul.f32 %v3259_v39, %v3433_v9 }
0x1a22   :  { %v1005_v41 = vadd.f32 %v1004_v40, %v3439_v20 }
0x1a24   :  { %1008 = vrot.lane.b32.xlu0 %v1005_v41, %s3351_s29  ;;  %v1006_v45 = vmul.f32 %v1005_v41, %v902_v17 }
0x1a96   :  { %v1009_v2 = vpop.permute.xlu0 %1008 }
0x1a97   :  { %v1011_v42 = vmul.f32 %v1009_v2, %v1005_v41 }
0x1a99   :  { %1013 = vrot.lane.b32.xlu1 %v1011_v42, %s3352_s30 }
0x1b0b   :  { %v1014_v46 = vpop.permute.xlu1 %1013 }
0x1b0c   :  { %v1016_v47 = vadd.f32 %v1014_v46, %v1006_v45 }
0x1b0e   :  { %3260 = vtanh.f32 %v1016_v47 }
0x1b1b   :  { %v3261_v48 = vpop.eup %3260 }
0x1b1c   :  { %1019 = vrot.lane.b32.xlu0 %v3261_v48, %s3351_s29 }
0x1b8e   :  { %v1020_v49 = vpop.permute.xlu0 %1019 }
0x1b8f   :  { %v1022_v50 = vmul.f32 %v1020_v49, %v1005_v41 }
0x1b91   :  { %v1023_v51 = vpack.c.bf16 %v1022_v50, %v1022_v50 }
0x1b93   :  { %1025 = vrot.lane.b32.xlu1 %v1023_v51, %s3352_s30 }
0x1c05   :  { %v3701_v56 = vpop.permute.xlu1 %1025 }
0x1c06   :  { %2972 = vmatmul.mubr.msk.bf16.vlgmr.msra.gmra.mxu0 %vm53_vm4, %v3701_v56 }
0x1c07   :  { %2984 = vmatpush3.bf16.msra.mxu0 %v3567_v53  ;;  %2987 = vmatprep.mubr.msk.bf16.mxu0 %vm3348_vm0, %v3347_v0 }
0x1c08   :  { %2985 = vmatprep.subr.bf16.mxu0 %v3347_v0 }
0x1c0b   :  { %2986 = vmatpush3.bf16.msra.mxu0 %v3572_v54 }
0x1c0c   :  { %2999 = vmatprep.subr.bf16.mxu0 %v3347_v0 }
0x1cc6   :  { %v1064_v57 = vpop.f32.mrf.mxu0 }
0x1cc7   :  { %v1105_v58 = vadd.f32 %v3650_v27, %v1064_v57 }
0x1cc8   :  { %v2973_v59 = vpop.f32.mrf.mxu0 }
0x1cc9   :  { %v1110_v60 = vadd.f32 %v3644_v7, %v1105_v58 }
0x1cca   :  { %v1067_v62 = vpop.f32.mrf.mxu0 }
0x1ccb   :  { %v1111_v32 = vmul.f32 %v1110_v60, %v3433_v9 }
0x1ccc   :  { %v2974_v55 = vpop.f32.mrf.mxu0 }
0x1ccd   :  { %v2678_v19 = vmul.f32 -1.442695, %v1111_v32 }
0x1ccf   :  { %3262 = vpow2.f32 %v2678_v19 }
0x1cdc   :  { %v3263_v44 = vpop.eup %3262 }
0x1cdd   :  { %v1115_v4 = vadd.f32 1.0, %v3263_v44 }
0x1cdf   :  { %3264 = vrcp.f32 %v1115_v4 }
0x1cec   :  { %v3265_v5 = vpop.eup %3264 }
0x1ced   :  { %v1118_v6 = vmul.f32 %v3265_v5, %v3433_v9  ;;  %v574_v5 = vld [vmem:[%s4040_s0 + $0x38] sm:$0xff] }
0x1cef   :  { %v1119_v8 = vadd.f32 %v1118_v6, %v3439_v20  ;;  %v622_v6 = vadd.f32 %v3639_v63, %v574_v5 }
0x1cf1   :  { %1122 = vrot.lane.b32.xlu0 %v1119_v8, %s3351_s29  ;;  %v1120_v11 = vmul.f32 %v1119_v8, %v1016_v47 }
0x1d63   :  { %v1123_v27 = vpop.permute.xlu0 %1122 }
0x1d64   :  { %v1125_v10 = vmul.f32 %v1123_v27, %v1119_v8 }
0x1d66   :  { %1127 = vrot.lane.b32.xlu1 %v1125_v10, %s3352_s30 }
0x1dd8   :  { %v1128_v12 = vpop.permute.xlu1 %1127 }
0x1dd9   :  { %v1130_v13 = vadd.f32 %v1128_v12, %v1120_v11 }
0x1ddb   :  { %3266 = vtanh.f32 %v1130_v13 }
0x1de8   :  { %v3267_v14 = vpop.eup %3266 }
0x1de9   :  { %1133 = vrot.lane.b32.xlu0 %v3267_v14, %s3351_s29 }
0x1e5b   :  { %v1134_v15 = vpop.permute.xlu0 %1133 }
0x1e5c   :  { %v1136_v1 = vmul.f32 %v1134_v15, %v1119_v8  ;;  %v623_v8 = vmul.f32 %v622_v6, %v3433_v9 }
0x1e5e   :  { %v1137_v16 = vpack.c.bf16 %v1136_v1, %v1136_v1  ;;  %v2662_v27 = vmul.f32 -1.442695, %v623_v8 }
0x1e60   :  { %1139 = vrot.lane.b32.xlu1 %v1137_v16, %s3352_s30 }
0x1ed2   :  { %v3720_v17 = vpop.permute.xlu1 %1139 }
0x1ed3   :  { %2988 = vmatmul.mubr.msk.bf16.vlgmr.msra.gmra.mxu0 %vm53_vm4, %v3720_v17 }
0x1ed4   :  { %3000 = vmatpush3.bf16.msra.mxu0 %v3567_v53  ;;  %3003 = vmatprep.mubr.msk.bf16.mxu0 %vm3348_vm0, %v3347_v0 }
0x1ed5   :  { %3001 = vmatprep.subr.bf16.mxu0 %v3347_v0 }
0x1ed8   :  { %3002 = vmatpush3.bf16.msra.mxu0 %v3572_v54 }
0x1ed9   :  { %3015 = vmatprep.subr.bf16.mxu0 %v3347_v0 }
0x1f93   :  { %v1178_v18 = vpop.f32.mrf.mxu0 }
0x1f94   :  { %v1219_v21 = vadd.f32 %v3652_v31, %v1178_v18 }
0x1f95   :  { %v2989_v22 = vpop.f32.mrf.mxu0 }
0x1f96   :  { %v1224_v23 = vadd.f32 %v3644_v7, %v1219_v21 }
0x1f97   :  { %v1181_v25 = vpop.f32.mrf.mxu0 }
0x1f98   :  { %v1225_v26 = vmul.f32 %v1224_v23, %v3433_v9 }
0x1f99   :  { %v2990_v28 = vpop.f32.mrf.mxu0 }
0x1f9a   :  { %v2681_v29 = vmul.f32 -1.442695, %v1225_v26 }
0x1f9c   :  { %3268 = vpow2.f32 %v2681_v29 }
0x1fa9   :  { %v3269_v30 = vpop.eup %3268 }
0x1faa   :  { %v1229_v33 = vadd.f32 1.0, %v3269_v30 }
0x1fac   :  { %3270 = vrcp.f32 %v1229_v33 }
0x1fb9   :  { %v3271_v34 = vpop.eup %3270 }
0x1fba   :  { %v1232_v35 = vmul.f32 %v3271_v34, %v3433_v9 }
0x1fbc   :  { %v1233_v36 = vadd.f32 %v1232_v35, %v3439_v20 }
0x1fbe   :  { %1236 = vrot.lane.b32.xlu0 %v1233_v36, %s3351_s29  ;;  %v1234_v39 = vmul.f32 %v1233_v36, %v1130_v13 }
0x2030   :  { %v1237_v31 = vpop.permute.xlu0 %1236 }
0x2031   :  { %v1239_v37 = vmul.f32 %v1237_v31, %v1233_v36 }
0x2033   :  { %1241 = vrot.lane.b32.xlu1 %v1239_v37, %s3352_s30 }
0x20a5   :  { %v1242_v40 = vpop.permute.xlu1 %1241 }
0x20a6   :  { %v1244_v41 = vadd.f32 %v1242_v40, %v1234_v39 }
0x20a8   :  { %3272 = vtanh.f32 %v1244_v41 }
0x20b5   :  { %v3273_v2 = vpop.eup %3272 }
0x20b6   :  { %1247 = vrot.lane.b32.xlu0 %v3273_v2, %s3351_s29 }
0x2128   :  { %v1248_v42 = vpop.permute.xlu0 %1247 }
0x2129   :  { %v1250_v45 = vmul.f32 %v1248_v42, %v1233_v36 }
0x212b   :  { %v1251_v46 = vpack.c.bf16 %v1250_v45, %v1250_v45 }
0x212d   :  { %1253 = vrot.lane.b32.xlu1 %v1251_v46, %s3352_s30 }
0x219f   :  { %v3739_v47 = vpop.permute.xlu1 %1253 }
0x21a0   :  { %3004 = vmatmul.mubr.msk.bf16.vlgmr.msra.gmra.mxu0 %vm53_vm4, %v3739_v47 }
0x21a1   :  { %3016 = vmatpush3.bf16.msra.mxu0 %v3567_v53  ;;  %3019 = vmatprep.mubr.msk.bf16.mxu0 %vm3348_vm0, %v3347_v0 }
0x21a2   :  { %3017 = vmatprep.subr.bf16.mxu0 %v3347_v0 }
0x21a5   :  { %3018 = vmatpush3.bf16.msra.mxu0 %v3572_v54 }
0x21a6   :  { %3031 = vmatprep.subr.bf16.mxu0 %v3347_v0 }
0x2260   :  { %v1292_v48 = vpop.f32.mrf.mxu0 }
0x2261   :  { %v1333_v49 = vadd.f32 %v3655_v38, %v1292_v48 }
0x2262   :  { %v3005_v50 = vpop.f32.mrf.mxu0 }
0x2263   :  { %v1338_v51 = vadd.f32 %v3644_v7, %v1333_v49 }
0x2264   :  { %v1295_v57 = vpop.f32.mrf.mxu0 }
0x2265   :  { %v1339_v58 = vmul.f32 %v1338_v51, %v3433_v9 }
0x2266   :  { %v3006_v59 = vpop.f32.mrf.mxu0 }
0x2267   :  { %v2684_v60 = vmul.f32 -1.442695, %v1339_v58 }
0x2269   :  { %3274 = vpow2.f32 %v2684_v60  ;;  %v3198_v60 = vld [vmem:[%s4042_s2 + $0x18] sm:$0xff]  }
0x2276   :  { %v3275_v62 = vpop.eup %3274 }
0x2277   :  { %v1343_v32 = vadd.f32 1.0, %v3275_v62 }
0x2279   :  { %3276 = vrcp.f32 %v1343_v32 }
0x227a   :  { %3278 = vpow2.f32 %v2662_v27 }
0x2286   :  { %v3277_v55 = vpop.eup %3276 }
0x2287   :  { %v1346_v19 = vmul.f32 %v3277_v55, %v3433_v9  ;;  %v3279_v10 = vpop.eup %3278  ;;  %v3199_v55 = vld [vmem:[%s4042_s2 + $0x10] sm:$0xff]  }
0x2288   :  { %v627_v11 = vadd.f32 1.0, %v3279_v10 }
0x2289   :  { %v1347_v44 = vadd.f32 %v1346_v19, %v3439_v20 }
0x228a   :  { %3280 = vrcp.f32 %v627_v11 }
0x228b   :  { %1350 = vrot.lane.b32.xlu0 %v1347_v44, %s3351_s29  ;;  %v1348_v12 = vmul.f32 %v1347_v44, %v1244_v41 }
0x2297   :  { %v3281_v15 = vpop.eup %3280 }
0x2298   :  { %v630_v1 = vmul.f32 %v3281_v15, %v3433_v9 }
0x229a   :  { %v631_v18 = vadd.f32 %v630_v1, %v3439_v20 }
0x229c   :  { %v632_v28 = vmul.f32 %v631_v18, %v3561_v52 }
0x22fd   :  { %v1351_v38 = vpop.permute.xlu0 %1350 }
0x22fe   :  { %v1353_v4 = vmul.f32 %v1351_v38, %v1347_v44 }
0x2300   :  { %1355 = vrot.lane.b32.xlu1 %v1353_v4, %s3352_s30 }
0x2372   :  { %v1356_v13 = vpop.permute.xlu1 %1355 }
0x2373   :  { %v1358_v14 = vadd.f32 %v1356_v13, %v1348_v12 }
0x2375   :  { %3282 = vtanh.f32 %v1358_v14 }
0x2382   :  { %v3283_v16 = vpop.eup %3282 }
0x2383   :  { %1361 = vrot.lane.b32.xlu0 %v3283_v16, %s3351_s29 }
0x2387   :  { %634 = vrot.lane.b32.xlu0 %v631_v18, %s3351_s29 }
0x23f5   :  { %v1362_v63 = vpop.permute.xlu0 %1361 }
0x23f6   :  { %v1364_v21 = vmul.f32 %v1362_v63, %v1347_v44 }
0x23f8   :  { %v1365_v22 = vpack.c.bf16 %v1364_v21, %v1364_v21 }
0x23f9   :  { %v635_v23 = vpop.permute.xlu0 %634 }
0x23fa   :  { %v637_v25 = vmul.f32 %v635_v23, %v631_v18  ;;  %1367 = vrot.lane.b32.xlu1 %v1365_v22, %s3352_s30 }
0x23fc   :  { %639 = vrot.lane.b32.xlu0 %v637_v25, %s3352_s30 }
0x246c   :  { %v3767_v26 = vpop.permute.xlu1 %1367 }
0x246d   :  { %3020 = vmatmul.mubr.msk.bf16.vlgmr.msra.gmra.mxu0 %vm53_vm4, %v3767_v26 }
0x246e   :  { %v640_v29 = vpop.permute.xlu0 %639  ;;  %3032 = vmatpush3.bf16.msra.mxu0 %v3567_v53  ;;  %3035 = vmatprep.mubr.msk.bf16.mxu0 %vm3348_vm0, %v3347_v0 }
0x246f   :  { %v642_v30 = vadd.f32 %v640_v29, %v632_v28  ;;  %3033 = vmatprep.subr.bf16.mxu0 %v3347_v0 }
0x2471   :  { %3284 = vtanh.f32 %v642_v30 }
0x2472   :  { %3034 = vmatpush3.bf16.msra.mxu0 %v3572_v54 }
0x2473   :  { %3047 = vmatprep.subr.bf16.mxu0 %v3347_v0 }
0x247e   :  { %v3285_v33 = vpop.eup %3284 }
0x247f   :  { %645 = vrot.lane.b32.xlu0 %v3285_v33, %s3351_s29 }
0x24f1   :  { %v646_v49 = vpop.permute.xlu0 %645 }
0x24f2   :  { %v648_v50 = vmul.f32 %v646_v49, %v631_v18 }
0x24f4   :  { %v1479_v57 = vpack.c.bf16 %v648_v50, %v648_v50 }
0x252d   :  { %v1406_v34 = vpop.f32.mrf.mxu0 }
0x252e   :  { %v1447_v52 = vadd.f32 %v3659_v43, %v1406_v34 }
0x252f   :  { %v3021_v35 = vpop.f32.mrf.mxu0 }
0x2530   :  { %v1452_v53 = vadd.f32 %v3644_v7, %v1447_v52 }
0x2531   :  { %v1409_v36 = vpop.f32.mrf.mxu0 }
0x2532   :  { %v1453_v31 = vmul.f32 %v1452_v53, %v3433_v9 }
0x2533   :  { %v3022_v37 = vpop.f32.mrf.mxu0 }
0x2534   :  { %v2687_v39 = vmul.f32 -1.442695, %v1453_v31  ;;  %v3886_v37 = vld [vmem:[%s4043_s4 + $0x1] ss:$0 sm:$0xff] }
0x2536   :  { %3286 = vpow2.f32 %v2687_v39 }
0x2543   :  { %v3287_v40 = vpop.eup %3286 }
0x2544   :  { %v1457_v41 = vadd.f32 1.0, %v3287_v40 }
0x2546   :  { %3288 = vrcp.f32 %v1457_v41 }
0x2553   :  { %v3289_v54 = vpop.eup %3288 }
0x2554   :  { %v1460_v2 = vmul.f32 %v3289_v54, %v3433_v9 }
0x2556   :  { %v1461_v42 = vadd.f32 %v1460_v2, %v3439_v20 }
0x2558   :  { %1464 = vrot.lane.b32.xlu1 %v1461_v42, %s3351_s29  ;;  %v1462_v7 = vmul.f32 %v1461_v42, %v1358_v14 }
0x25ca   :  { %v1465_v43 = vpop.permute.xlu1 %1464 }
0x25cb   :  { %v1467_v45 = vmul.f32 %v1465_v43, %v1461_v42 }
0x25cd   :  { %1469 = vrot.lane.b32.xlu1 %v1467_v45, %s3352_s30 }
0x263f   :  { %v1470_v46 = vpop.permute.xlu1 %1469 }
0x2640   :  { %v3786_v48 = vadd.f32 %v1470_v46, %v1462_v7 }
0x2642   :  { %3290 = vtanh.f32 %v3786_v48 }
0x264f   :  { %v3291_v51 = vpop.eup %3290 }
0x2650   :  { %1475 = vrot.lane.b32.xlu1 %v3291_v51, %s3351_s29 }
0x2654   :  { %1528 = vrot.lane.b32.xlu1 %v1479_v57, %s3352_s30 }
0x26c2   :  { %v1476_v58 = vpop.permute.xlu1 %1475 }
0x26c3   :  { %v1478_v59 = vmul.f32 %v1476_v58, %v1461_v42 }
0x26c5   :  { %v1480_v62 = vpack.c.bf16 %v1478_v59, %v1478_v59 }
0x26c6   :  { %v1529_v32 = vpop.permute.xlu1 %1528 }
0x26c7   :  { %1482 = vrot.lane.b32.xlu0 %v1480_v62, %s3352_s30  ;;  %3044 = vmatmul.mubr.msk.bf16.vlgmr.msra.gmra.mxu1 %vm53_vm4, %v1529_v32 }
0x26c8   :  { %3056 = vmatpush3.bf16.msra.mxu1 %v3198_v60  ;;  %3059 = vmatprep.mubr.msk.bf16.mxu1 %vm3348_vm0, %v3347_v0 }
0x26c9   :  { %3057 = vmatprep.subr.bf16.mxu1 %v3347_v0 }
0x26cc   :  { %3058 = vmatpush3.bf16.msra.mxu1 %v3199_v55 }
0x26cd   :  { %3071 = vmatprep.subr.bf16.mxu1 %v3347_v0 }
0x26cf   :  { %3060 = vmatmul.mubr.msk.bf16.vlgmr.msra.gmra.mxu1 %vm53_vm4, %v3664_v61  ;;  %v3842_v61 = vld [vmem:[%s4041_s3 + $0x18] sm:$0xff]  }
0x26d0   :  { %3072 = vmatpush3.bf16.msra.mxu1 %v3198_v60  ;;  %3075 = vmatprep.mubr.msk.bf16.mxu1 %vm3348_vm0, %v3347_v0 }
0x26d1   :  { %3073 = vmatprep.subr.bf16.mxu1 %v3347_v0 }
0x26d4   :  { %3074 = vmatpush3.bf16.msra.mxu1 %v3199_v55 }
0x26d5   :  { %3087 = vmatprep.subr.bf16.mxu1 %v3347_v0 }
0x26d7   :  { %3076 = vmatmul.mubr.msk.bf16.vlgmr.msra.gmra.mxu1 %vm53_vm4, %v3682_v24 }
0x26d8   :  { %3088 = vmatpush3.bf16.msra.mxu1 %v3198_v60  ;;  %3091 = vmatprep.mubr.msk.bf16.mxu1 %vm3348_vm0, %v3347_v0 }
0x26d9   :  { %3089 = vmatprep.subr.bf16.mxu1 %v3347_v0 }
0x26dc   :  { %3090 = vmatpush3.bf16.msra.mxu1 %v3199_v55 }
0x26dd   :  { %3103 = vmatprep.subr.bf16.mxu1 %v3347_v0 }
0x26df   :  { %3092 = vmatmul.mubr.msk.bf16.vlgmr.msra.gmra.mxu1 %vm53_vm4, %v3701_v56  ;;  %v3850_v56 = vld [vmem:[%s4041_s3 + $0x10] sm:$0xff]  }
0x26e0   :  { %3104 = vmatpush3.bf16.msra.mxu1 %v3198_v60  ;;  %3107 = vmatprep.mubr.msk.bf16.mxu1 %vm3348_vm0, %v3347_v0 }
0x26e1   :  { %3105 = vmatprep.subr.bf16.mxu1 %v3347_v0 }
0x26e4   :  { %3106 = vmatpush3.bf16.msra.mxu1 %v3199_v55 }
0x26e5   :  { %3119 = vmatprep.subr.bf16.mxu1 %v3347_v0 }
0x26e7   :  { %3108 = vmatmul.mubr.msk.bf16.vlgmr.msra.gmra.mxu1 %vm53_vm4, %v3720_v17 }
0x26e8   :  { %3120 = vmatpush3.bf16.msra.mxu1 %v3198_v60  ;;  %3123 = vmatprep.mubr.msk.bf16.mxu1 %vm3348_vm0, %v3347_v0 }
0x26e9   :  { %3121 = vmatprep.subr.bf16.mxu1 %v3347_v0 }
0x26ec   :  { %3122 = vmatpush3.bf16.msra.mxu1 %v3199_v55 }
0x26ed   :  { %3135 = vmatprep.subr.bf16.mxu1 %v3347_v0 }
0x26ef   :  { %3124 = vmatmul.mubr.msk.bf16.vlgmr.msra.gmra.mxu1 %vm53_vm4, %v3739_v47 }
0x26f0   :  { %3136 = vmatpush3.bf16.msra.mxu1 %v3198_v60  ;;  %3139 = vmatprep.mubr.msk.bf16.mxu1 %vm3348_vm0, %v3347_v0 }
0x26f1   :  { %3137 = vmatprep.subr.bf16.mxu1 %v3347_v0 }
0x26f4   :  { %3138 = vmatpush3.bf16.msra.mxu1 %v3199_v55 }
0x26f5   :  { %3151 = vmatprep.subr.bf16.mxu1 %v3347_v0 }
0x26f7   :  { %3140 = vmatmul.mubr.msk.bf16.vlgmr.msra.gmra.mxu1 %vm53_vm4, %v3767_v26 }
0x26f8   :  { %3152 = vmatpush3.bf16.msra.mxu1 %v3198_v60  ;;  %3155 = vmatprep.mubr.msk.bf16.mxu1 %vm3348_vm0, %v3347_v0 }
0x26f9   :  { %3153 = vmatprep.subr.bf16.mxu1 %v3347_v0 }
0x26fc   :  { %3154 = vmatpush3.bf16.msra.mxu1 %v3199_v55 }
0x26fd   :  { %3167 = vmatprep.subr.bf16.mxu1 %v3347_v0 }
0x2739   :  { %v1483_v24 = vpop.permute.xlu0 %1482 }
0x273a   :  { %3036 = vmatmul.mubr.msk.bf16.vlgmr.msra.gmra.mxu0 %vm53_vm4, %v1483_v24  ;;  %3156 = vmatmul.mubr.msk.bf16.vlgmr.msra.gmra.mxu1 %vm53_vm4, %v1483_v24 }
0x273b   :  { %3048 = vmatpush3.bf16.msra.mxu0 %v3842_v61  ;;  %3051 = vmatprep.mubr.msk.bf16.mxu0 %vm3348_vm0, %v3347_v0 }
0x273c   :  { %3049 = vmatprep.subr.bf16.mxu0 %v3347_v0  ;;  %3168 = vmatpush3.bf16.msra.mxu1 %v3198_v60 }
0x273d   :  { %3169 = vmatprep.subr.bf16.mxu1 %v3347_v0  ;;  %3171 = vmatprep.mubr.msk.bf16.mxu1 %vm3348_vm0, %v3347_v0 }
0x273f   :  { %3050 = vmatpush3.bf16.msra.mxu0 %v3850_v56 }
0x2740   :  { %3063 = vmatprep.subr.bf16.mxu0 %v3347_v0  ;;  %3170 = vmatpush3.bf16.msra.mxu1 %v3199_v55 }
0x2742   :  { %3052 = vmatmul.mubr.bf16.vlgmr.msra.gmra.mxu0 %v3349_v3 }
0x2743   :  { %3064 = vmatpush3.bf16.msra.mxu0 %v3842_v61  ;;  %3067 = vmatprep.mubr.msk.bf16.mxu0 %vm3348_vm0, %v3347_v0 }
0x2744   :  { %3065 = vmatprep.subr.bf16.mxu0 %v3347_v0 }
0x2747   :  { %3066 = vmatpush3.bf16.msra.mxu0 %v3850_v56 }
0x2748   :  { %3079 = vmatprep.subr.bf16.mxu0 %v3347_v0 }
0x2787   :  { %v3867_v17 = vpop.f32.mrf.mxu1 }
0x2789   :  { %v3045_v47 = vpop.f32.mrf.mxu1 }
0x278b   :  { %v1570_v19 = vpop.f32.mrf.mxu1 }
0x278d   :  { %v3046_v44 = vpop.f32.mrf.mxu1 }
0x278f   :  { %v1710_v38 = vpop.f32.mrf.mxu1 }
0x2791   :  { %v3061_v4 = vpop.f32.mrf.mxu1 }
0x2793   :  { %v1713_v5 = vpop.f32.mrf.mxu1 }
0x2795   :  { %v3062_v3 = vpop.f32.mrf.mxu1 }
0x2797   :  { %v3869_v6 = vpop.f32.mrf.mxu1 }
0x2799   :  { %v3077_v8 = vpop.f32.mrf.mxu1 }
0x279b   :  { %v1833_v27 = vpop.f32.mrf.mxu1 }
0x279d   :  { %v3078_v10 = vpop.f32.mrf.mxu1 }
0x279f   :  { %v3871_v11 = vpop.f32.mrf.mxu1 }
0x27a1   :  { %v3093_v12 = vpop.f32.mrf.mxu1 }
0x27a3   :  { %v1947_v13 = vpop.f32.mrf.mxu1 }
0x27a5   :  { %v3094_v14 = vpop.f32.mrf.mxu1 }
0x27a7   :  { %v3873_v15 = vpop.f32.mrf.mxu1 }
0x27a9   :  { %v3109_v1 = vpop.f32.mrf.mxu1 }
0x27ab   :  { %v2061_v16 = vpop.f32.mrf.mxu1 }
0x27ad   :  { %v3110_v18 = vpop.f32.mrf.mxu1 }
0x27af   :  { %v3875_v63 = vpop.f32.mrf.mxu1 }
0x27b1   :  { %v3125_v21 = vpop.f32.mrf.mxu1 }
0x27b3   :  { %v2175_v22 = vpop.f32.mrf.mxu1 }
0x27b5   :  { %v3126_v23 = vpop.f32.mrf.mxu1 }
0x27b7   :  { %v3877_v25 = vpop.f32.mrf.mxu1 }
0x27b9   :  { %v3141_v26 = vpop.f32.mrf.mxu1 }
0x27bb   :  { %v2289_v28 = vpop.f32.mrf.mxu1 }
0x27bd   :  { %v3142_v29 = vpop.f32.mrf.mxu1 }
0x27fa   :  { %v3879_v30 = vpop.f32.mrf.mxu0  ;;  %v3881_v33 = vpop.f32.mrf.mxu1 }
0x27fc   :  { %v3037_v34 = vpop.f32.mrf.mxu0  ;;  %v3157_v52 = vpop.f32.mrf.mxu1 }
0x27fe   :  { %v1524_v35 = vpop.f32.mrf.mxu0  ;;  %v2403_v53 = vpop.f32.mrf.mxu1 }
0x2800   :  { %v3038_v36 = vpop.f32.mrf.mxu0  ;;  %v3158_v31 = vpop.f32.mrf.mxu1 }
0x2802   :  { %v1658_v39 = vpop.f32.mrf.mxu0 }
0x2803   :  { %v1711_v40 = vadd.f32 %v1710_v38, %v1658_v39 }
0x2804   :  { %v3053_v41 = vpop.f32.mrf.mxu0 }
0x2805   :  { %v1722_v54 = vadd.f32 %v3886_v37, %v1711_v40 }
0x2806   :  { %v1661_v2 = vpop.f32.mrf.mxu0 }
0x2807   :  { %v1723_v42 = vmul.f32 %v1722_v54, %v3433_v9 }
0x2808   :  { %v3054_v43 = vpop.f32.mrf.mxu0 }
0x2809   :  { %v2706_v45 = vmul.f32 -1.442695, %v1723_v42 }
0x280b   :  { %3292 = vpow2.f32 %v2706_v45 }
0x2818   :  { %v3293_v7 = vpop.eup %3292 }
0x2819   :  { %v1727_v46 = vadd.f32 1.0, %v3293_v7 }
0x281b   :  { %3294 = vrcp.f32 %v1727_v46 }
0x2828   :  { %v3295_v49 = vpop.eup %3294 }
0x2829   :  { %v1730_v50 = vmul.f32 %v3295_v49, %v3433_v9 }
0x282b   :  { %v1731_v51 = vadd.f32 %v1730_v50, %v3439_v20 }
0x282d   :  { %1734 = vrot.lane.b32.xlu0 %v1731_v51, %s3351_s29  ;;  %v1732_v59 = vmul.f32 0.0, %v1731_v51 }
0x289f   :  { %v1735_v57 = vpop.permute.xlu0 %1734 }
0x28a0   :  { %v1737_v58 = vmul.f32 %v1735_v57, %v1731_v51 }
0x28a2   :  { %1739 = vrot.lane.b32.xlu1 %v1737_v58, %s3352_s30 }
0x2914   :  { %v1740_v60 = vpop.permute.xlu1 %1739 }
0x2915   :  { %v1742_v62 = vadd.f32 %v1740_v60, %v1732_v59 }
0x2917   :  { %3296 = vtanh.f32 %v1742_v62 }
0x2924   :  { %v3297_v32 = vpop.eup %3296 }
0x2925   :  { %1745 = vrot.lane.b32.xlu0 %v3297_v32, %s3351_s29 }
0x2997   :  { %v1746_v55 = vpop.permute.xlu0 %1745 }
0x2998   :  { %v1748_v24 = vmul.f32 %v1746_v55, %v1731_v51 }
0x299a   :  { %v1749_v47 = vpack.c.bf16 %v1748_v24, %v1748_v24 }
0x299c   :  { %1751 = vrot.lane.b32.xlu1 %v1749_v47, %s3352_s30 }
0x2a0e   :  { %v1752_v19 = vpop.permute.xlu1 %1751 }
0x2a0f   :  { %3068 = vmatmul.mubr.msk.bf16.vlgmr.msra.gmra.mxu0 %vm53_vm4, %v1752_v19 }
0x2a10   :  { %3080 = vmatpush3.bf16.msra.mxu0 %v3842_v61  ;;  %3083 = vmatprep.mubr.msk.bf16.mxu0 %vm3348_vm0, %v3347_v0 }
0x2a11   :  { %3081 = vmatprep.subr.bf16.mxu0 %v3347_v0 }
0x2a14   :  { %3082 = vmatpush3.bf16.msra.mxu0 %v3850_v56 }
0x2a15   :  { %3095 = vmatprep.subr.bf16.mxu0 %v3347_v0 }
0x2acf   :  { %v1790_v44 = vpop.f32.mrf.mxu0 }
0x2ad0   :  { %v1831_v38 = vadd.f32 %v3869_v6, %v1790_v44 }
0x2ad1   :  { %v3069_v4 = vpop.f32.mrf.mxu0 }
0x2ad2   :  { %v1836_v5 = vadd.f32 %v3886_v37, %v1831_v38 }
0x2ad3   :  { %v1793_v3 = vpop.f32.mrf.mxu0 }
0x2ad4   :  { %v1837_v8 = vmul.f32 %v1836_v5, %v3433_v9 }
0x2ad5   :  { %v3070_v27 = vpop.f32.mrf.mxu0 }
0x2ad6   :  { %v2709_v10 = vmul.f32 -1.442695, %v1837_v8 }
0x2ad8   :  { %3298 = vpow2.f32 %v2709_v10 }
0x2ae5   :  { %v3299_v12 = vpop.eup %3298 }
0x2ae6   :  { %v1841_v13 = vadd.f32 1.0, %v3299_v12 }
0x2ae8   :  { %3300 = vrcp.f32 %v1841_v13 }
0x2af5   :  { %v3301_v14 = vpop.eup %3300 }
0x2af6   :  { %v1844_v1 = vmul.f32 %v3301_v14, %v3433_v9 }
0x2af8   :  { %v1845_v16 = vadd.f32 %v1844_v1, %v3439_v20 }
0x2afa   :  { %1848 = vrot.lane.b32.xlu0 %v1845_v16, %s3351_s29  ;;  %v1846_v21 = vmul.f32 %v1845_v16, %v1742_v62 }
0x2b6c   :  { %v1849_v6 = vpop.permute.xlu0 %1848 }
0x2b6d   :  { %v1851_v18 = vmul.f32 %v1849_v6, %v1845_v16 }
0x2b6f   :  { %1853 = vrot.lane.b32.xlu1 %v1851_v18, %s3352_s30 }
0x2be1   :  { %v1854_v22 = vpop.permute.xlu1 %1853 }
0x2be2   :  { %v1856_v23 = vadd.f32 %v1854_v22, %v1846_v21 }
0x2be4   :  { %3302 = vtanh.f32 %v1856_v23 }
0x2bf1   :  { %v3303_v26 = vpop.eup %3302 }
0x2bf2   :  { %1859 = vrot.lane.b32.xlu0 %v3303_v26, %s3351_s29 }
0x2c64   :  { %v1860_v28 = vpop.permute.xlu0 %1859 }
0x2c65   :  { %v1862_v29 = vmul.f32 %v1860_v28, %v1845_v16 }
0x2c67   :  { %v1863_v34 = vpack.c.bf16 %v1862_v29, %v1862_v29 }
0x2c69   :  { %1865 = vrot.lane.b32.xlu1 %v1863_v34, %s3352_s30 }
0x2cdb   :  { %v1866_v52 = vpop.permute.xlu1 %1865 }
0x2cdc   :  { %3084 = vmatmul.mubr.msk.bf16.vlgmr.msra.gmra.mxu0 %vm53_vm4, %v1866_v52 }
0x2cdd   :  { %3096 = vmatpush3.bf16.msra.mxu0 %v3842_v61  ;;  %3099 = vmatprep.mubr.msk.bf16.mxu0 %vm3348_vm0, %v3347_v0 }
0x2cde   :  { %3097 = vmatprep.subr.bf16.mxu0 %v3347_v0 }
0x2ce1   :  { %3098 = vmatpush3.bf16.msra.mxu0 %v3850_v56 }
0x2ce2   :  { %3111 = vmatprep.subr.bf16.mxu0 %v3347_v0 }
0x2d9c   :  { %v1904_v35 = vpop.f32.mrf.mxu0 }
0x2d9d   :  { %v1945_v53 = vadd.f32 %v3871_v11, %v1904_v35 }
0x2d9e   :  { %v3085_v36 = vpop.f32.mrf.mxu0 }
0x2d9f   :  { %v1950_v31 = vadd.f32 %v3886_v37, %v1945_v53 }
0x2da0   :  { %v1907_v39 = vpop.f32.mrf.mxu0 }
0x2da1   :  { %v1951_v40 = vmul.f32 %v1950_v31, %v3433_v9 }
0x2da2   :  { %v3086_v41 = vpop.f32.mrf.mxu0 }
0x2da3   :  { %v2712_v54 = vmul.f32 -1.442695, %v1951_v40 }
0x2da5   :  { %3304 = vpow2.f32 %v2712_v54 }
0x2db2   :  { %v3305_v2 = vpop.eup %3304 }
0x2db3   :  { %v1955_v42 = vadd.f32 1.0, %v3305_v2 }
0x2db5   :  { %3306 = vrcp.f32 %v1955_v42 }
0x2dc2   :  { %v3307_v43 = vpop.eup %3306 }
0x2dc3   :  { %v1958_v45 = vmul.f32 %v3307_v43, %v3433_v9 }
0x2dc5   :  { %v1959_v7 = vadd.f32 %v1958_v45, %v3439_v20 }
0x2dc7   :  { %1962 = vrot.lane.b32.xlu0 %v1959_v7, %s3351_s29  ;;  %v1960_v49 = vmul.f32 %v1959_v7, %v1856_v23 }
0x2e39   :  { %v1963_v11 = vpop.permute.xlu0 %1962 }
0x2e3a   :  { %v1965_v46 = vmul.f32 %v1963_v11, %v1959_v7 }
0x2e3c   :  { %1967 = vrot.lane.b32.xlu1 %v1965_v46, %s3352_s30 }
0x2eae   :  { %v1968_v50 = vpop.permute.xlu1 %1967 }
0x2eaf   :  { %v1970_v51 = vadd.f32 %v1968_v50, %v1960_v49 }
0x2eb1   :  { %3308 = vtanh.f32 %v1970_v51 }
0x2ebe   :  { %v3309_v57 = vpop.eup %3308 }
0x2ebf   :  { %1973 = vrot.lane.b32.xlu0 %v3309_v57, %s3351_s29 }
0x2f31   :  { %v1974_v58 = vpop.permute.xlu0 %1973 }
0x2f32   :  { %v1976_v59 = vmul.f32 %v1974_v58, %v1959_v7 }
0x2f34   :  { %v1977_v60 = vpack.c.bf16 %v1976_v59, %v1976_v59 }
0x2f36   :  { %1979 = vrot.lane.b32.xlu1 %v1977_v60, %s3352_s30 }
0x2fa8   :  { %v1980_v62 = vpop.permute.xlu1 %1979 }
0x2fa9   :  { %3100 = vmatmul.mubr.msk.bf16.vlgmr.msra.gmra.mxu0 %vm53_vm4, %v1980_v62 }
0x2faa   :  { %3112 = vmatpush3.bf16.msra.mxu0 %v3842_v61  ;;  %3115 = vmatprep.mubr.msk.bf16.mxu0 %vm3348_vm0, %v3347_v0 }
0x2fab   :  { %3113 = vmatprep.subr.bf16.mxu0 %v3347_v0 }
0x2fae   :  { %3114 = vmatpush3.bf16.msra.mxu0 %v3850_v56 }
0x2faf   :  { %3127 = vmatprep.subr.bf16.mxu0 %v3347_v0 }
0x3069   :  { %v2018_v32 = vpop.f32.mrf.mxu0 }
0x306a   :  { %v2059_v55 = vadd.f32 %v3873_v15, %v2018_v32 }
0x306b   :  { %v3101_v24 = vpop.f32.mrf.mxu0 }
0x306c   :  { %v2064_v47 = vadd.f32 %v3886_v37, %v2059_v55 }
0x306d   :  { %v2021_v19 = vpop.f32.mrf.mxu0 }
0x306e   :  { %v2065_v44 = vmul.f32 %v2064_v47, %v3433_v9 }
0x306f   :  { %v3102_v38 = vpop.f32.mrf.mxu0 }
0x3070   :  { %v2715_v4 = vmul.f32 -1.442695, %v2065_v44 }
0x3072   :  { %3310 = vpow2.f32 %v2715_v4  ;;  %v1568_v4 = vadd.f32 %v3867_v17, %v3879_v30 }
0x307f   :  { %v3311_v5 = vpop.eup %3310 }
0x3080   :  { %v2069_v3 = vadd.f32 1.0, %v3311_v5  ;;  %v3346_v5 = vld [vmem:[%s4043_s4] ss:$0 sm:$0xff] }
0x3082   :  { %3312 = vrcp.f32 %v2069_v3  ;;  %v1573_v3 = vadd.f32 %v3346_v5, %v1568_v4 }
0x308f   :  { %v3313_v8 = vpop.eup %3312 }
0x3090   :  { %v2072_v27 = vmul.f32 %v3313_v8, %v3433_v9  ;;  %v1574_v8 = vmul.f32 %v1573_v3, %v3433_v9 }
0x3092   :  { %v2073_v10 = vadd.f32 %v2072_v27, %v3439_v20  ;;  %v2690_v27 = vmul.f32 -1.442695, %v1574_v8 }
0x3094   :  { %2076 = vrot.lane.b32.xlu0 %v2073_v10, %s3351_s29  ;;  %v2074_v13 = vmul.f32 %v2073_v10, %v1970_v51 }
0x3106   :  { %v2077_v15 = vpop.permute.xlu0 %2076 }
0x3107   :  { %v2079_v12 = vmul.f32 %v2077_v15, %v2073_v10 }
0x3109   :  { %2081 = vrot.lane.b32.xlu1 %v2079_v12, %s3352_s30 }
0x317b   :  { %v2082_v14 = vpop.permute.xlu1 %2081 }
0x317c   :  { %v2084_v1 = vadd.f32 %v2082_v14, %v2074_v13 }
0x317e   :  { %3314 = vtanh.f32 %v2084_v1 }
0x318b   :  { %v3315_v16 = vpop.eup %3314 }
0x318c   :  { %2087 = vrot.lane.b32.xlu0 %v3315_v16, %s3351_s29 }
0x31fe   :  { %v2088_v6 = vpop.permute.xlu0 %2087 }
0x31ff   :  { %v2090_v18 = vmul.f32 %v2088_v6, %v2073_v10 }
0x3201   :  { %v2091_v21 = vpack.c.bf16 %v2090_v18, %v2090_v18 }
0x3203   :  { %2093 = vrot.lane.b32.xlu1 %v2091_v21, %s3352_s30 }
0x3275   :  { %v2094_v22 = vpop.permute.xlu1 %2093 }
0x3276   :  { %3116 = vmatmul.mubr.msk.bf16.vlgmr.msra.gmra.mxu0 %vm53_vm4, %v2094_v22 }
0x3277   :  { %3128 = vmatpush3.bf16.msra.mxu0 %v3842_v61  ;;  %3131 = vmatprep.mubr.msk.bf16.mxu0 %vm3348_vm0, %v3347_v0 }
0x3278   :  { %3129 = vmatprep.subr.bf16.mxu0 %v3347_v0 }
0x327b   :  { %3130 = vmatpush3.bf16.msra.mxu0 %v3850_v56 }
0x327c   :  { %3143 = vmatprep.subr.bf16.mxu0 %v3347_v0 }
0x3336   :  { %v2132_v23 = vpop.f32.mrf.mxu0 }
0x3337   :  { %v2173_v26 = vadd.f32 %v3875_v63, %v2132_v23 }
0x3338   :  { %v3117_v28 = vpop.f32.mrf.mxu0 }
0x3339   :  { %v2178_v29 = vadd.f32 %v3886_v37, %v2173_v26 }
0x333a   :  { %v2135_v34 = vpop.f32.mrf.mxu0 }
0x333b   :  { %v2179_v52 = vmul.f32 %v2178_v29, %v3433_v9 }
0x333c   :  { %v3118_v35 = vpop.f32.mrf.mxu0 }
0x333d   :  { %v2718_v53 = vmul.f32 -1.442695, %v2179_v52 }
0x333f   :  { %3316 = vpow2.f32 %v2718_v53 }
0x334c   :  { %v3317_v36 = vpop.eup %3316 }
0x334d   :  { %v2183_v31 = vadd.f32 1.0, %v3317_v36 }
0x334f   :  { %3318 = vrcp.f32 %v2183_v31 }
0x335c   :  { %v3319_v39 = vpop.eup %3318 }
0x335d   :  { %v2186_v40 = vmul.f32 %v3319_v39, %v3433_v9 }
0x335f   :  { %v2187_v41 = vadd.f32 %v2186_v40, %v3439_v20 }
0x3361   :  { %2190 = vrot.lane.b32.xlu0 %v2187_v41, %s3351_s29  ;;  %v2188_v2 = vmul.f32 %v2187_v41, %v2084_v1 }
0x33d3   :  { %v2191_v63 = vpop.permute.xlu0 %2190 }
0x33d4   :  { %v2193_v54 = vmul.f32 %v2191_v63, %v2187_v41 }
0x33d6   :  { %2195 = vrot.lane.b32.xlu1 %v2193_v54, %s3352_s30 }
0x3448   :  { %v2196_v42 = vpop.permute.xlu1 %2195 }
0x3449   :  { %v2198_v43 = vadd.f32 %v2196_v42, %v2188_v2 }
0x344b   :  { %3320 = vtanh.f32 %v2198_v43 }
0x3458   :  { %v3321_v45 = vpop.eup %3320 }
0x3459   :  { %2201 = vrot.lane.b32.xlu0 %v3321_v45, %s3351_s29 }
0x34cb   :  { %v2202_v7 = vpop.permute.xlu0 %2201 }
0x34cc   :  { %v2204_v11 = vmul.f32 %v2202_v7, %v2187_v41 }
0x34ce   :  { %v2205_v46 = vpack.c.bf16 %v2204_v11, %v2204_v11 }
0x34d0   :  { %2207 = vrot.lane.b32.xlu1 %v2205_v46, %s3352_s30 }
0x3542   :  { %v2208_v49 = vpop.permute.xlu1 %2207 }
0x3543   :  { %3132 = vmatmul.mubr.msk.bf16.vlgmr.msra.gmra.mxu0 %vm53_vm4, %v2208_v49 }
0x3544   :  { %3144 = vmatpush3.bf16.msra.mxu0 %v3842_v61  ;;  %3147 = vmatprep.mubr.msk.bf16.mxu0 %vm3348_vm0, %v3347_v0 }
0x3545   :  { %3145 = vmatprep.subr.bf16.mxu0 %v3347_v0 }
0x3548   :  { %3146 = vmatpush3.bf16.msra.mxu0 %v3850_v56 }
0x3549   :  { %3159 = vmatprep.subr.bf16.mxu0 %v3347_v0 }
0x3603   :  { %v2246_v50 = vpop.f32.mrf.mxu0 }
0x3604   :  { %v2287_v51 = vadd.f32 %v3877_v25, %v2246_v50 }
0x3605   :  { %v3133_v57 = vpop.f32.mrf.mxu0 }
0x3606   :  { %v2292_v58 = vadd.f32 %v3886_v37, %v2287_v51 }
0x3607   :  { %v2249_v59 = vpop.f32.mrf.mxu0 }
0x3608   :  { %v2293_v60 = vmul.f32 %v2292_v58, %v3433_v9 }
0x3609   :  { %v3134_v62 = vpop.f32.mrf.mxu0 }
0x360a   :  { %v2721_v32 = vmul.f32 -1.442695, %v2293_v60 }
0x360c   :  { %3322 = vpow2.f32 %v2721_v32 }
0x3619   :  { %v3323_v55 = vpop.eup %3322 }
0x361a   :  { %v2297_v24 = vadd.f32 1.0, %v3323_v55 }
0x361c   :  { %3324 = vrcp.f32 %v2297_v24 }
0x361d   :  { %3326 = vpow2.f32 %v2690_v27 }
0x3629   :  { %v3325_v47 = vpop.eup %3324 }
0x362a   :  { %v2300_v19 = vmul.f32 %v3325_v47, %v3433_v9  ;;  %v3327_v10 = vpop.eup %3326 }
0x362b   :  { %v1578_v15 = vadd.f32 1.0, %v3327_v10 }
0x362c   :  { %v2301_v44 = vadd.f32 %v2300_v19, %v3439_v20 }
0x362d   :  { %3328 = vrcp.f32 %v1578_v15 }
0x362e   :  { %2304 = vrot.lane.b32.xlu0 %v2301_v44, %s3351_s29  ;;  %v2302_v12 = vmul.f32 %v2301_v44, %v2198_v43 }
0x363a   :  { %v3329_v1 = vpop.eup %3328 }
0x363b   :  { %v1581_v16 = vmul.f32 %v3329_v1, %v3433_v9 }
0x363d   :  { %v1582_v30 = vadd.f32 %v1581_v16, %v3439_v20 }
0x363f   :  { %v1583_v28 = vmul.f32 %v1582_v30, %v3786_v48 }
0x36a0   :  { %v2305_v25 = vpop.permute.xlu0 %2304 }
0x36a1   :  { %v2307_v38 = vmul.f32 %v2305_v25, %v2301_v44 }
0x36a3   :  { %2309 = vrot.lane.b32.xlu1 %v2307_v38, %s3352_s30 }
0x3715   :  { %v2310_v13 = vpop.permute.xlu1 %2309 }
0x3716   :  { %v2312_v14 = vadd.f32 %v2310_v13, %v2302_v12 }
0x3718   :  { %3330 = vtanh.f32 %v2312_v14 }
0x3725   :  { %v3331_v17 = vpop.eup %3330 }
0x3726   :  { %2315 = vrot.lane.b32.xlu0 %v3331_v17, %s3351_s29  ;;  %v2557_v17 = vld [vmem:[%s4044_s5 + $0x18] sm:$0xff] }
0x372a   :  { %1585 = vrot.lane.b32.xlu0 %v1582_v30, %s3351_s29 }
0x3798   :  { %v2316_v6 = vpop.permute.xlu0 %2315 }
0x3799   :  { %v2318_v18 = vmul.f32 %v2316_v6, %v2301_v44 }
0x379b   :  { %v2319_v21 = vpack.c.bf16 %v2318_v18, %v2318_v18  ;;  %v12_v18 = vstv %s4045_s6 }
0x379c   :  { %v1586_v22 = vpop.permute.xlu0 %1585  ;;  %13 = vst [vmem:[#allocation2] sm:$0x1] %v12_v18 }
0x379d   :  { %v1588_v23 = vmul.f32 %v1586_v22, %v1582_v30  ;;  %2321 = vrot.lane.b32.xlu1 %v2319_v21, %s3352_s30 }
0x379f   :  { %1590 = vrot.lane.b32.xlu0 %v1588_v23, %s3352_s30 }
0x380f   :  { %v2322_v26 = vpop.permute.xlu1 %2321 }
0x3810   :  { %3148 = vmatmul.mubr.msk.bf16.vlgmr.msra.gmra.mxu0 %vm53_vm4, %v2322_v26  ;;  %v2728_v26 = vld [vmem:[#allocation2] ss:$0 sm:$0xff] }
0x3811   :  { %v1591_v29 = vpop.permute.xlu0 %1590  ;;  %3160 = vmatpush3.bf16.msra.mxu0 %v3842_v61  ;;  %3163 = vmatprep.mubr.msk.bf16.mxu0 %vm3348_vm0, %v3347_v0 }
0x3812   :  { %v1593_v34 = vadd.f32 %v1591_v29, %v1583_v28  ;;  %3161 = vmatprep.subr.bf16.mxu0 %v3347_v0 }
0x3814   :  { %3332 = vtanh.f32 %v1593_v34 }
0x3815   :  { %3162 = vmatpush3.bf16.msra.mxu0 %v3850_v56 }
0x3816   :  { %3175 = vmatprep.subr.mxu0 %v3347_v0 }
0x3821   :  { %v3333_v52 = vpop.eup %3332 }
0x3822   :  { %1596 = vrot.lane.b32.xlu0 %v3333_v52, %s3351_s29 }
0x3894   :  { %v1597_v11 = vpop.permute.xlu0 %1596 }
0x3895   :  { %v1599_v46 = vmul.f32 %v1597_v11, %v1582_v30  ;;  %v2554_v30 = vld [vmem:[%s4044_s5] sm:$0xff] }
0x3897   :  { %v2433_v50 = vpack.c.bf16 %v1599_v46, %v1599_v46 }
0x38d0   :  { %v2360_v35 = vpop.f32.mrf.mxu0 }
0x38d1   :  { %v2401_v48 = vadd.f32 %v3881_v33, %v2360_v35 }
0x38d2   :  { %v3149_v53 = vpop.f32.mrf.mxu0 }
0x38d3   :  { %v2406_v61 = vadd.f32 %v3886_v37, %v2401_v48 }
0x38d4   :  { %v2363_v36 = vpop.f32.mrf.mxu0 }
0x38d5   :  { %v2407_v31 = vmul.f32 %v2406_v61, %v3433_v9 }
0x38d6   :  { %v3150_v39 = vpop.f32.mrf.mxu0 }
0x38d7   :  { %v2724_v40 = vmul.f32 -1.442695, %v2407_v31 }
0x38d9   :  { %3334 = vpow2.f32 %v2724_v40 }
0x38e6   :  { %v3335_v41 = vpop.eup %3334 }
0x38e7   :  { %v2411_v63 = vadd.f32 1.0, %v3335_v41 }
0x38e9   :  { %3336 = vrcp.f32 %v2411_v63 }
0x38f6   :  { %v3337_v56 = vpop.eup %3336 }
0x38f7   :  { %v2414_v54 = vmul.f32 %v3337_v56, %v3433_v9 }
0x38f9   :  { %v2415_v2 = vadd.f32 %v2414_v54, %v3439_v20 }
0x38fb   :  { %2418 = vrot.lane.b32.xlu1 %v2415_v2, %s3351_s29  ;;  %v2416_v43 = vmul.f32 %v2415_v2, %v2312_v14 }
0x396d   :  { %v2419_v33 = vpop.permute.xlu1 %2418 }
0x396e   :  { %v2421_v42 = vmul.f32 %v2419_v33, %v2415_v2 }
0x3970   :  { %2423 = vrot.lane.b32.xlu1 %v2421_v42, %s3352_s30 }
0x39e2   :  { %v2424_v45 = vpop.permute.xlu1 %2423 }
0x39e3   :  { %v2426_v7 = vadd.f32 %v2424_v45, %v2416_v43 }
0x39e5   :  { %3338 = vtanh.f32 %v2426_v7 }
0x39f2   :  { %v3339_v49 = vpop.eup %3338 }
0x39f3   :  { %2429 = vrot.lane.b32.xlu1 %v3339_v49, %s3351_s29 }
0x39f7   :  { %2482 = vrot.lane.b32.xlu1 %v2433_v50, %s3352_s30 }
0x3a65   :  { %v2430_v51 = vpop.permute.xlu1 %2429 }
0x3a66   :  { %v2432_v57 = vmul.f32 %v2430_v51, %v2415_v2 }
0x3a68   :  { %v2434_v58 = vpack.c.bf16 %v2432_v57, %v2432_v57 }
0x3a69   :  { %v2483_v59 = vpop.permute.xlu1 %2482 }
0x3a6a   :  { %2436 = vrot.lane.b32.xlu0 %v2434_v58, %s3352_s30  ;;  %3172 = vmatmul.mubr.msk.bf16.vlgmr.msra.gmra.mxu1 %vm53_vm4, %v2483_v59 }
0x3adc   :  { %v2437_v60 = vpop.permute.xlu0 %2436 }
0x3add   :  { %3164 = vmatmul.mubr.msk.bf16.vlgmr.msra.gmra.mxu0 %vm53_vm4, %v2437_v60 }
0x3ade   :  { %3183 = vmatprep.mubr.msk.f32.mxu0 %vm3348_vm0, %v3347_v0  ;;  %3176 = vmatpush3.msra.mxu0 %v2557_v17 }
0x3adf   :  { %3177 = vmatprep.subr.mxu0 %v3347_v0 }
0x3b2a   :  { %v2521_v62 = vpop.f32.mrf.mxu1 }
0x3b2c   :  { %v3173_v32 = vpop.f32.mrf.mxu1 }
0x3b2e   :  { %v2524_v55 = vpop.f32.mrf.mxu1 }
0x3b30   :  { %v3174_v24 = vpop.f32.mrf.mxu1 }
0x3b9d   :  { %v2475_v47 = vpop.f32.mrf.mxu0 }
0x3b9e   :  { %v2522_v19 = vadd.f32 %v2521_v62, %v2475_v47 }
0x3b9f   :  { %v3165_v44 = vpop.f32.mrf.mxu0 }
0x3ba0   :  { %v2527_v25 = vadd.f32 %v3886_v37, %v2522_v19 }
0x3ba1   :  { %v2478_v38 = vpop.f32.mrf.mxu0 }
0x3ba2   :  { %v2528_v4 = vmul.f32 %v2527_v25, %v3433_v9 }
0x3ba3   :  { %v3166_v5 = vpop.f32.mrf.mxu0 }
0x3ba4   :  { %v2727_v3 = vmul.f32 -1.442695, %v2528_v4 }
0x3ba6   :  { %3340 = vpow2.f32 %v2727_v3 }
0x3bb3   :  { %v3341_v8 = vpop.eup %3340 }
0x3bb4   :  { %v2532_v27 = vadd.f32 1.0, %v3341_v8 }
0x3bb6   :  { %3342 = vrcp.f32 %v2532_v27 }
0x3bc3   :  { %v3343_v10 = vpop.eup %3342 }
0x3bc4   :  { %v2535_v15 = vmul.f32 %v3343_v10, %v3433_v9  ;;  %v2556_v9 = vld [vmem:[%s4044_s5 + $0x10] sm:$0xff] }
0x3bc5   :  { %3178 = vmatpush3.msra.mxu0 %v2556_v9 }
0x3bc6   :  { %v2536_v12 = vadd.f32 %v2535_v15, %v3439_v20  ;;  %v2555_v20 = vld [vmem:[%s4044_s5 + $0x8] sm:$0xff]  ;;  %3179 = vmatprep.subr.mxu0 %v3347_v0 }
0x3bc7   :  { %3180 = vmatpush3.msra.mxu0 %v2555_v20 }
0x3bc8   :  { %2539 = vrot.lane.b32.xlu0 %v2536_v12, %s3351_s29  ;;  %v2537_v37 = vmul.f32 %v2536_v12, %v2426_v7  ;;  %3181 = vmatprep.subr.mxu0 %v3347_v0 }
0x3bc9   :  { %3182 = vmatpush3.msra.mxu0 %v2554_v30 }
0x3c3a   :  { %v2540_v13 = vpop.permute.xlu0 %2539 }
0x3c3b   :  { %v2542_v14 = vmul.f32 %v2540_v13, %v2536_v12 }
0x3c3d   :  { %2544 = vrot.lane.b32.xlu1 %v2542_v14, %s3352_s30 }
0x3caf   :  { %v2545_v1 = vpop.permute.xlu1 %2544 }
0x3cb0   :  { %v2547_v16 = vadd.f32 %v2545_v1, %v2537_v37 }
0x3cb2   :  { %3344 = vtanh.f32 %v2547_v16 }
0x3cbf   :  { %v3345_v6 = vpop.eup %3344 }
0x3cc0   :  { %2550 = vrot.lane.b32.xlu0 %v3345_v6, %s3351_s29 }
0x3d32   :  { %v2551_v21 = vpop.permute.xlu0 %2550 }
0x3d33   :  { %v2553_v22 = vmul.f32 %v2551_v21, %v2536_v12 }
0x3d35   :  { %2566 = vrot.lane.b32.xlu1 %v2553_v22, %s3352_s30 }
0x3da7   :  { %v2567_v23 = vpop.permute.xlu1 %2566 }
0x3da8   :  { %3184 = vmatmul.mubr.msk.f32.vlgmr.msra.gmra.mxu0 %vm53_vm4, %v2567_v23 }
0x3e68   :  { %v2636_v28 = vpop.f32.mrf.mxu0 }
0x3e69   :  { %v2637_v0 = vadd.f32 %v2728_v26, %v2636_v28 }
0x3e6a   :  { %v3185_v29 = vpop.f32.mrf.mxu0 }
0x3e6b   :  { %2641 = vst.msk [vmem:[%s4046_s7] sm:$0xff] %vm2640_vm5, %v2637_v0 }

</bundles_post_ra>
